<compile_context>
chip_gen: v5e
topology: v5e:2x2
jax: 0.10.0
libtpu: 0.0.40
codegen_flags: <defaults>
</compile_context>

<pallas_src>
import functools

import jax
import jax.numpy as jnp
from jax.experimental import pallas as pl
from jax.experimental.pallas import tpu as pltpu


def _round_up(x, m):
    return (x + m - 1) // m * m


def _decoder_kernel(
    emb_ref, key_ref, val_ref, mask_ref,
    w1_ref, b1_ref, w2_ref, b2_ref, wp_ref, bp_ref,
    pred_out_ref, attn_out_ref,
    h1, c1, h2, c2, ctx,
    *, n_steps,
):
    H = h1.shape[-1]
    K = h2.shape[-1]
    cd = w1_ref.dtype                      # MXU input dtype (bf16 or f32)

    # hidden_states / context start at zero for every (independent) batch block
    h1[...] = jnp.zeros_like(h1)
    c1[...] = jnp.zeros_like(c1)
    h2[...] = jnp.zeros_like(h2)
    c2[...] = jnp.zeros_like(c2)
    ctx[...] = jnp.zeros_like(ctx)

    @pl.loop(0, n_steps)
    def _(step):
        x = emb_ref[step]                                   # (Bt, H) teacher-forced embed

        # ---- LSTMCell 1: fused concat([char_embed, context, h1]) @ W1 ------
        inp1 = jnp.concatenate([x, ctx[...], h1[...]], axis=-1).astype(cd)
        gates1 = (jnp.dot(inp1, w1_ref[...], preferred_element_type=jnp.float32)
                  + b1_ref[...])
        i1 = jax.nn.sigmoid(gates1[:, 0 * H:1 * H])
        f1 = jax.nn.sigmoid(gates1[:, 1 * H:2 * H])
        g1 = jnp.tanh(gates1[:, 2 * H:3 * H])
        o1 = jax.nn.sigmoid(gates1[:, 3 * H:4 * H])
        c1_new = f1 * c1[...] + i1 * g1
        h1_new = o1 * jnp.tanh(c1_new)

        # ---- LSTMCell 2: fused concat([h1_new, h2]) @ W2 --------------------
        inp2 = jnp.concatenate([h1_new, h2[...]], axis=-1).astype(cd)
        gates2 = (jnp.dot(inp2, w2_ref[...], preferred_element_type=jnp.float32)
                  + b2_ref[...])
        i2 = jax.nn.sigmoid(gates2[:, 0 * K:1 * K])
        f2 = jax.nn.sigmoid(gates2[:, 1 * K:2 * K])
        g2 = jnp.tanh(gates2[:, 2 * K:3 * K])
        o2 = jax.nn.sigmoid(gates2[:, 3 * K:4 * K])
        c2_new = f2 * c2[...] + i2 * g2
        h2_new = o2 * jnp.tanh(c2_new)

        # ---- Attention(query=h2_new, key, values, lens) on the MXU ----------
        mask = mask_ref[...]                                        # (Bt, Tp) f32
        q = h2_new.astype(cd)[:, None, :]                           # (Bt, 1, K)
        energy = jnp.einsum('bqk,btk->bqt', q, key_ref[...],
                            preferred_element_type=jnp.float32)[:, 0, :]
        # masked softmax == reference softmax->mask->renorm (exactly), but
        # numerically safe against padded-T positions dominating the max.
        energy = jnp.where(mask > 0, energy, jnp.float32(-1e30))
        m = jnp.max(energy, axis=-1, keepdims=True)
        e = jnp.exp(energy - m) * mask
        norm_attn = e * pl.reciprocal(jnp.sum(e, axis=-1, keepdims=True),
                                      approx=True)
        ctx_new = jnp.einsum('bqt,btv->bqv',
                             norm_attn.astype(cd)[:, None, :], val_ref[...],
                             preferred_element_type=jnp.float32)[:, 0, :]

        # ---- character_prob: fused concat([output, context]) @ Wp -----------
        po = jnp.concatenate([h2_new, ctx_new], axis=-1).astype(cd)
        pred = (jnp.dot(po, wp_ref[...], preferred_element_type=jnp.float32)
                + bp_ref[...])

        pred_out_ref[step] = pred                                   # lane-dense (Vp)
        attn_out_ref[step] = norm_attn                              # lane-dense (Tp)

        # carry recurrent state
        h1[...] = h1_new
        c1[...] = c1_new
        h2[...] = h2_new
        c2[...] = c2_new
        ctx[...] = ctx_new


def make_decoder_params(rng, vocab_size, hidden_dim, value_size=128, key_size=128):
    ks = jax.random.split(rng, 12)
    s = 0.1
    p = {}
    emb = jax.random.normal(ks[0], (vocab_size, hidden_dim), jnp.float32) * s
    p["embedding"] = emb.at[0].set(0.0)                         # padding_idx=0
    p["w_ih1"] = jax.random.normal(ks[1], (4 * hidden_dim, hidden_dim + value_size), jnp.float32) * s
    p["w_hh1"] = jax.random.normal(ks[2], (4 * hidden_dim, hidden_dim), jnp.float32) * s
    p["b_ih1"] = jax.random.normal(ks[3], (4 * hidden_dim,), jnp.float32) * s
    p["b_hh1"] = jax.random.normal(ks[4], (4 * hidden_dim,), jnp.float32) * s
    p["w_ih2"] = jax.random.normal(ks[5], (4 * key_size, hidden_dim), jnp.float32) * s
    p["w_hh2"] = jax.random.normal(ks[6], (4 * key_size, key_size), jnp.float32) * s
    p["b_ih2"] = jax.random.normal(ks[7], (4 * key_size,), jnp.float32) * s
    p["b_hh2"] = jax.random.normal(ks[8], (4 * key_size,), jnp.float32) * s
    p["w_cp"] = jax.random.normal(ks[9], (vocab_size, key_size + value_size), jnp.float32) * s
    p["b_cp"] = jax.random.normal(ks[10], (vocab_size,), jnp.float32) * s
    return p


def decoder_forward(params, enc_key, enc_values, lens, text, *,
                    batch_block=8, matmul_dtype=jnp.bfloat16):
    """Training-mode (teacher-forced) Decoder forward with attention."""
    B, T, K = enc_key.shape
    Vs = enc_values.shape[-1]
    V, H = params["embedding"].shape
    L = text.shape[1]
    n_steps = L - 1
    f32 = jnp.float32

    # ---- padding: lane-dense outputs (V, T -> x128), sublane-aligned batch ----
    Bt = _round_up(batch_block, 8)
    Bp = _round_up(B, Bt)
    Tp = _round_up(T, 128)
    Vp = _round_up(V, 128)

    key_p = jnp.pad(enc_key, ((0, Bp - B), (0, Tp - T), (0, 0))).astype(matmul_dtype)
    val_p = jnp.pad(enc_values, ((0, Bp - B), (0, Tp - T), (0, 0))).astype(matmul_dtype)
    text_p = jnp.pad(text, ((0, Bp - B), (0, 0)))                   # pad with idx 0
    lens_p = jnp.pad(lens, (0, Bp - B), constant_values=1)          # avoid 0/0 on pad rows
    # attention_mask[b, t] = t < lens[b]   (zero beyond padded T as well)
    mask = (jnp.arange(Tp)[None, :] < lens_p[:, None]).astype(f32)  # (Bp, Tp)

    # glue: embedding gather + layout (L, B, H) so decode step is leading axis
    embeddings = jnp.transpose(params["embedding"][text_p], (1, 0, 2)).astype(f32)

    # weight plumbing: fuse input/hidden weights, fold biases, pad vocab cols
    w1 = jnp.concatenate([params["w_ih1"].T, params["w_hh1"].T], axis=0).astype(matmul_dtype)  # (H+Vs+H, 4H)
    b1 = (params["b_ih1"] + params["b_hh1"])[None, :].astype(f32)
    w2 = jnp.concatenate([params["w_ih2"].T, params["w_hh2"].T], axis=0).astype(matmul_dtype)  # (H+K, 4K)
    b2 = (params["b_ih2"] + params["b_hh2"])[None, :].astype(f32)
    wp = jnp.pad(params["w_cp"].T, ((0, 0), (0, Vp - V))).astype(matmul_dtype)                 # (K+Vs, Vp)
    bp = jnp.pad(params["b_cp"], (0, Vp - V))[None, :].astype(f32)

    # ---- VMEM budget from the actual resident blocks ----
    isz = jnp.dtype(matmul_dtype).itemsize
    resident = (
        L * Bt * H * 4                              # embeddings block
        + Bt * Tp * K * isz + Bt * Tp * Vs * isz    # key / values blocks
        + Bt * Tp * 4                               # mask block
        + (w1.size + w2.size + wp.size) * isz
        + (b1.size + b2.size + bp.size) * 4
        + n_steps * Bt * Vp * 4                     # prediction output block
        + n_steps * Bt * Tp * 4                     # attention output block
        + Bt * (2 * H + 2 * K + Vs) * 4             # recurrent-state scratch
    )
    vmem_limit = int(min(max(2 * resident + (4 << 20), 32 << 20), 100 << 20))

    inv = lambda shape: pl.BlockSpec(shape, lambda b: (0,) * len(shape))
    kernel = functools.partial(_decoder_kernel, n_steps=n_steps)

    preds_p, attn_p = pl.pallas_call(
        kernel,
        out_shape=(jax.ShapeDtypeStruct((n_steps, Bp, Vp), f32),
                   jax.ShapeDtypeStruct((n_steps, Bp, Tp), f32)),
        grid_spec=pltpu.PrefetchScalarGridSpec(
            num_scalar_prefetch=0,
            grid=(Bp // Bt,),                        # parallel over batch blocks
            in_specs=[
                pl.BlockSpec((L, Bt, H), lambda b: (0, b, 0)),      # embeddings
                pl.BlockSpec((Bt, Tp, K), lambda b: (b, 0, 0)),     # key
                pl.BlockSpec((Bt, Tp, Vs), lambda b: (b, 0, 0)),    # values
                pl.BlockSpec((Bt, Tp), lambda b: (b, 0)),           # length mask
                inv((2 * H + Vs, 4 * H)), inv((1, 4 * H)),          # W1, b1
                inv((H + K, 4 * K)), inv((1, 4 * K)),               # W2, b2
                inv((K + Vs, Vp)), inv((1, Vp)),                    # Wp, bp
            ],
            out_specs=[
                pl.BlockSpec((n_steps, Bt, Vp), lambda b: (0, b, 0)),
                pl.BlockSpec((n_steps, Bt, Tp), lambda b: (0, b, 0)),
            ],
            scratch_shapes=[
                pltpu.VMEM((Bt, H), f32),    # h1
                pltpu.VMEM((Bt, H), f32),    # c1
                pltpu.VMEM((Bt, K), f32),    # h2
                pltpu.VMEM((Bt, K), f32),    # c2
                pltpu.VMEM((Bt, Vs), f32),   # context
            ],
        ),
        compiler_params=pltpu.CompilerParams(
            dimension_semantics=("parallel",),
            vmem_limit_bytes=vmem_limit,
        ),
    )(embeddings, key_p, val_p, mask, w1, b1, w2, b2, wp, bp)

    # back to PyTorch convention: (B, max_len-1, vocab); attention (L-1, B, T)
    preds = jnp.transpose(preds_p[:, :B, :V], (1, 0, 2))
    attn_maps = attn_p[:, :B, :T]
    return preds, attn_maps


if __name__ == "__main__":
    B, T, L = 4, 8, 6                 # batch, encoder timesteps, text length
    vocab_size, hidden_dim = 32, 128
    value_size, key_size = 128, 128

    root = jax.random.PRNGKey(0)
    k_par, k_key, k_val, k_txt = jax.random.split(root, 4)

    params = make_decoder_params(k_par, vocab_size, hidden_dim, value_size, key_size)
    enc_key = jax.random.normal(k_key, (B, T, key_size), jnp.float32)
    enc_values = jax.random.normal(k_val, (B, T, value_size), jnp.float32)
    text = jax.random.randint(k_txt, (B, L), 0, vocab_size)
    lens = jnp.array([8, 6, 5, 7], dtype=jnp.int32)

    preds, attn_maps = decoder_forward(params, enc_key, enc_values, lens, text)
    preds, attn_maps = jax.block_until_ready((preds, attn_maps))

    assert preds.shape == (B, L - 1, vocab_size)
    assert attn_maps.shape == (L - 1, B, T)
    assert bool(jnp.all(jnp.isfinite(preds)))
    assert bool(jnp.all(jnp.isfinite(attn_maps)))
    print("KERNEL_OK")
</pallas_src>

<mosaic_0001>
module attributes {stable_mosaic.version = 11 : i64} {
  func.func @_decoder_kernel(%arg0: i32, %arg1: memref<6x8x128xf32, #tpu.memory_space<vmem>>, %arg2: memref<8x128x128xbf16, #tpu.memory_space<vmem>>, %arg3: memref<8x128x128xbf16, #tpu.memory_space<vmem>>, %arg4: memref<8x128xf32, #tpu.memory_space<vmem>>, %arg5: memref<384x512xbf16, #tpu.memory_space<vmem>>, %arg6: memref<1x512xf32, #tpu.memory_space<vmem>>, %arg7: memref<256x512xbf16, #tpu.memory_space<vmem>>, %arg8: memref<1x512xf32, #tpu.memory_space<vmem>>, %arg9: memref<256x128xbf16, #tpu.memory_space<vmem>>, %arg10: memref<1x128xf32, #tpu.memory_space<vmem>>, %arg11: memref<5x8x128xf32, #tpu.memory_space<vmem>>, %arg12: memref<5x8x128xf32, #tpu.memory_space<vmem>>, %arg13: memref<8x128xf32, #tpu.memory_space<vmem>>, %arg14: memref<8x128xf32, #tpu.memory_space<vmem>>, %arg15: memref<8x128xf32, #tpu.memory_space<vmem>>, %arg16: memref<8x128xf32, #tpu.memory_space<vmem>>, %arg17: memref<8x128xf32, #tpu.memory_space<vmem>>) attributes {dimension_semantics = [#tpu.dimension_semantics<parallel>], iteration_bounds = array<i64: 1>, scalar_prefetch = 0 : i64, scratch_operands = 5 : i64, tpu.core_type = #tpu.core_type<tc>, window_params = [{transform_indices = @transform_0, window_bounds = array<i64: 6, 8, 128>}, {transform_indices = @transform_1, window_bounds = array<i64: 8, 128, 128>}, {transform_indices = @transform_2, window_bounds = array<i64: 8, 128, 128>}, {transform_indices = @transform_3, window_bounds = array<i64: 8, 128>}, {pipeline_mode = #tpu.pipeline_mode<synchronous>, transform_indices = @transform_4, window_bounds = array<i64: 384, 512>}, {pipeline_mode = #tpu.pipeline_mode<synchronous>, transform_indices = @transform_5, window_bounds = array<i64: 1, 512>}, {pipeline_mode = #tpu.pipeline_mode<synchronous>, transform_indices = @transform_6, window_bounds = array<i64: 256, 512>}, {pipeline_mode = #tpu.pipeline_mode<synchronous>, transform_indices = @transform_7, window_bounds = array<i64: 1, 512>}, {pipeline_mode = #tpu.pipeline_mode<synchronous>, transform_indices = @transform_8, window_bounds = array<i64: 256, 128>}, {pipeline_mode = #tpu.pipeline_mode<synchronous>, transform_indices = @transform_9, window_bounds = array<i64: 1, 128>}, {transform_indices = @transform_10, window_bounds = array<i64: 5, 8, 128>}, {transform_indices = @transform_11, window_bounds = array<i64: 5, 8, 128>}]} {
    %cst = arith.constant 0.000000e+00 : f32
    %0 = vector.broadcast %cst : f32 to vector<8x128xf32>
    %c0 = arith.constant 0 : index
    %c0_0 = arith.constant 0 : index
    %1 = vector.load %arg13[%c0, %c0_0] : memref<8x128xf32, #tpu.memory_space<vmem>>, vector<8x128xf32>
    tpu.vector_store %arg13[%c0, %c0_0], %0 {strides = array<i32>} : memref<8x128xf32, #tpu.memory_space<vmem>>, vector<8x128xf32>,
    %cst_1 = arith.constant 0.000000e+00 : f32
    %2 = vector.broadcast %cst_1 : f32 to vector<8x128xf32>
    %c0_2 = arith.constant 0 : index
    %c0_3 = arith.constant 0 : index
    %3 = vector.load %arg14[%c0_2, %c0_3] : memref<8x128xf32, #tpu.memory_space<vmem>>, vector<8x128xf32>
    tpu.vector_store %arg14[%c0_2, %c0_3], %2 {strides = array<i32>} : memref<8x128xf32, #tpu.memory_space<vmem>>, vector<8x128xf32>,
    %cst_4 = arith.constant 0.000000e+00 : f32
    %4 = vector.broadcast %cst_4 : f32 to vector<8x128xf32>
    %c0_5 = arith.constant 0 : index
    %c0_6 = arith.constant 0 : index
    %5 = vector.load %arg15[%c0_5, %c0_6] : memref<8x128xf32, #tpu.memory_space<vmem>>, vector<8x128xf32>
    tpu.vector_store %arg15[%c0_5, %c0_6], %4 {strides = array<i32>} : memref<8x128xf32, #tpu.memory_space<vmem>>, vector<8x128xf32>,
    %cst_7 = arith.constant 0.000000e+00 : f32
    %6 = vector.broadcast %cst_7 : f32 to vector<8x128xf32>
    %c0_8 = arith.constant 0 : index
    %c0_9 = arith.constant 0 : index
    %7 = vector.load %arg16[%c0_8, %c0_9] : memref<8x128xf32, #tpu.memory_space<vmem>>, vector<8x128xf32>
    tpu.vector_store %arg16[%c0_8, %c0_9], %6 {strides = array<i32>} : memref<8x128xf32, #tpu.memory_space<vmem>>, vector<8x128xf32>,
    %cst_10 = arith.constant 0.000000e+00 : f32
    %8 = vector.broadcast %cst_10 : f32 to vector<8x128xf32>
    %c0_11 = arith.constant 0 : index
    %c0_12 = arith.constant 0 : index
    %9 = vector.load %arg17[%c0_11, %c0_12] : memref<8x128xf32, #tpu.memory_space<vmem>>, vector<8x128xf32>
    tpu.vector_store %arg17[%c0_11, %c0_12], %8 {strides = array<i32>} : memref<8x128xf32, #tpu.memory_space<vmem>>, vector<8x128xf32>,
    %c0_i32 = arith.constant 0 : i32
    %c5_i32 = arith.constant 5 : i32
    %10 = arith.addi %c0_i32, %c5_i32 : i32
    %c1_i32 = arith.constant 1 : i32
    scf.for %arg18 = %c0_i32 to %10 step %c1_i32  : i32 {
      %c1_i32_14 = arith.constant 1 : i32
      %11 = arith.muli %arg18, %c1_i32_14 : i32
      %c0_i32_15 = arith.constant 0 : i32
      %12 = arith.addi %c0_i32_15, %11 : i32
      %13 = arith.index_cast %12 : i32 to index
      %c0_16 = arith.constant 0 : index
      %c0_17 = arith.constant 0 : index
      %14 = vector.load %arg1[%13, %c0_16, %c0_17] : memref<6x8x128xf32, #tpu.memory_space<vmem>>, vector<1x8x128xf32>
      %15 = vector.shape_cast %14 : vector<1x8x128xf32> to vector<8x128xf32>
      %c0_18 = arith.constant 0 : index
      %c0_19 = arith.constant 0 : index
      %16 = vector.load %arg17[%c0_18, %c0_19] : memref<8x128xf32, #tpu.memory_space<vmem>>, vector<8x128xf32>
      %c0_20 = arith.constant 0 : index
      %c0_21 = arith.constant 0 : index
      %17 = vector.load %arg13[%c0_20, %c0_21] : memref<8x128xf32, #tpu.memory_space<vmem>>, vector<8x128xf32>
      %18 = tpu.concatenate %15, %16, %17 in 1 : vector<8x128xf32>, vector<8x128xf32>, vector<8x128xf32> -> vector<8x384xf32>
      %19 = arith.truncf %18 : vector<8x384xf32> to vector<8x384xbf16>
      %c0_22 = arith.constant 0 : index
      %c0_23 = arith.constant 0 : index
      %20 = vector.load %arg5[%c0_22, %c0_23] : memref<384x512xbf16, #tpu.memory_space<vmem>>, vector<384x512xbf16>
      %cst_24 = arith.constant dense<0.000000e+00> : vector<8x512xf32>
      %21 = tpu.matmul %19, %20, %cst_24 {dimension_numbers = #tpu.dot_dimension_numbers<[1], [0], [0], [1], [0, 0, 1, 1], [], []>} : vector<8x384xbf16>, vector<384x512xbf16>, vector<8x512xf32> -> vector<8x512xf32>
      %c0_25 = arith.constant 0 : index
      %c0_26 = arith.constant 0 : index
      %22 = vector.load %arg6[%c0_25, %c0_26] : memref<1x512xf32, #tpu.memory_space<vmem>>, vector<1x512xf32>
      %23 = vector.broadcast %22 : vector<1x512xf32> to vector<8x512xf32>
      %24 = arith.addf %21, %23 : vector<8x512xf32>
      %25 = vector.extract_strided_slice %24 {offsets = [0, 0], sizes = [8, 128], strides = [1, 1]} : vector<8x512xf32> to vector<8x128xf32>
      %26 = arith.negf %25 : vector<8x128xf32>
      %27 = math.exp %26 : vector<8x128xf32>
      %cst_27 = arith.constant 1.000000e+00 : f32
      %28 = vector.broadcast %cst_27 : f32 to vector<8x128xf32>
      %29 = arith.addf %28, %27 : vector<8x128xf32>
      %30 = arith.divf %28, %29 : vector<8x128xf32>
      %31 = vector.extract_strided_slice %24 {offsets = [0, 128], sizes = [8, 128], strides = [1, 1]} : vector<8x512xf32> to vector<8x128xf32>
      %32 = arith.negf %31 : vector<8x128xf32>
      %33 = math.exp %32 : vector<8x128xf32>
      %cst_28 = arith.constant 1.000000e+00 : f32
      %34 = vector.broadcast %cst_28 : f32 to vector<8x128xf32>
      %35 = arith.addf %34, %33 : vector<8x128xf32>
      %36 = arith.divf %34, %35 : vector<8x128xf32>
      %37 = vector.extract_strided_slice %24 {offsets = [0, 256], sizes = [8, 128], strides = [1, 1]} : vector<8x512xf32> to vector<8x128xf32>
      %38 = math.tanh %37 : vector<8x128xf32>
      %39 = vector.extract_strided_slice %24 {offsets = [0, 384], sizes = [8, 128], strides = [1, 1]} : vector<8x512xf32> to vector<8x128xf32>
      %40 = arith.negf %39 : vector<8x128xf32>
      %41 = math.exp %40 : vector<8x128xf32>
      %cst_29 = arith.constant 1.000000e+00 : f32
      %42 = vector.broadcast %cst_29 : f32 to vector<8x128xf32>
      %43 = arith.addf %42, %41 : vector<8x128xf32>
      %44 = arith.divf %42, %43 : vector<8x128xf32>
      %c0_30 = arith.constant 0 : index
      %c0_31 = arith.constant 0 : index
      %45 = vector.load %arg14[%c0_30, %c0_31] : memref<8x128xf32, #tpu.memory_space<vmem>>, vector<8x128xf32>
      %46 = arith.mulf %36, %45 : vector<8x128xf32>
      %47 = arith.mulf %30, %38 : vector<8x128xf32>
      %48 = arith.addf %46, %47 : vector<8x128xf32>
      %49 = math.tanh %48 : vector<8x128xf32>
      %50 = arith.mulf %44, %49 : vector<8x128xf32>
      %c0_32 = arith.constant 0 : index
      %c0_33 = arith.constant 0 : index
      %51 = vector.load %arg15[%c0_32, %c0_33] : memref<8x128xf32, #tpu.memory_space<vmem>>, vector<8x128xf32>
      %52 = tpu.concatenate %50, %51 in 1 : vector<8x128xf32>, vector<8x128xf32> -> vector<8x256xf32>
      %53 = arith.truncf %52 : vector<8x256xf32> to vector<8x256xbf16>
      %c0_34 = arith.constant 0 : index
      %c0_35 = arith.constant 0 : index
      %54 = vector.load %arg7[%c0_34, %c0_35] : memref<256x512xbf16, #tpu.memory_space<vmem>>, vector<256x512xbf16>
      %cst_36 = arith.constant dense<0.000000e+00> : vector<8x512xf32>
      %55 = tpu.matmul %53, %54, %cst_36 {dimension_numbers = #tpu.dot_dimension_numbers<[1], [0], [0], [1], [0, 0, 1, 1], [], []>} : vector<8x256xbf16>, vector<256x512xbf16>, vector<8x512xf32> -> vector<8x512xf32>
      %c0_37 = arith.constant 0 : index
      %c0_38 = arith.constant 0 : index
      %56 = vector.load %arg8[%c0_37, %c0_38] : memref<1x512xf32, #tpu.memory_space<vmem>>, vector<1x512xf32>
      %57 = vector.broadcast %56 : vector<1x512xf32> to vector<8x512xf32>
      %58 = arith.addf %55, %57 : vector<8x512xf32>
      %59 = vector.extract_strided_slice %58 {offsets = [0, 0], sizes = [8, 128], strides = [1, 1]} : vector<8x512xf32> to vector<8x128xf32>
      %60 = arith.negf %59 : vector<8x128xf32>
      %61 = math.exp %60 : vector<8x128xf32>
      %cst_39 = arith.constant 1.000000e+00 : f32
      %62 = vector.broadcast %cst_39 : f32 to vector<8x128xf32>
      %63 = arith.addf %62, %61 : vector<8x128xf32>
      %64 = arith.divf %62, %63 : vector<8x128xf32>
      %65 = vector.extract_strided_slice %58 {offsets = [0, 128], sizes = [8, 128], strides = [1, 1]} : vector<8x512xf32> to vector<8x128xf32>
      %66 = arith.negf %65 : vector<8x128xf32>
      %67 = math.exp %66 : vector<8x128xf32>
      %cst_40 = arith.constant 1.000000e+00 : f32
      %68 = vector.broadcast %cst_40 : f32 to vector<8x128xf32>
      %69 = arith.addf %68, %67 : vector<8x128xf32>
      %70 = arith.divf %68, %69 : vector<8x128xf32>
      %71 = vector.extract_strided_slice %58 {offsets = [0, 256], sizes = [8, 128], strides = [1, 1]} : vector<8x512xf32> to vector<8x128xf32>
      %72 = math.tanh %71 : vector<8x128xf32>
      %73 = vector.extract_strided_slice %58 {offsets = [0, 384], sizes = [8, 128], strides = [1, 1]} : vector<8x512xf32> to vector<8x128xf32>
      %74 = arith.negf %73 : vector<8x128xf32>
      %75 = math.exp %74 : vector<8x128xf32>
      %cst_41 = arith.constant 1.000000e+00 : f32
      %76 = vector.broadcast %cst_41 : f32 to vector<8x128xf32>
      %77 = arith.addf %76, %75 : vector<8x128xf32>
      %78 = arith.divf %76, %77 : vector<8x128xf32>
      %c0_42 = arith.constant 0 : index
      %c0_43 = arith.constant 0 : index
      %79 = vector.load %arg16[%c0_42, %c0_43] : memref<8x128xf32, #tpu.memory_space<vmem>>, vector<8x128xf32>
      %80 = arith.mulf %70, %79 : vector<8x128xf32>
      %81 = arith.mulf %64, %72 : vector<8x128xf32>
      %82 = arith.addf %80, %81 : vector<8x128xf32>
      %83 = math.tanh %82 : vector<8x128xf32>
      %84 = arith.mulf %78, %83 : vector<8x128xf32>
      %c0_44 = arith.constant 0 : index
      %c0_45 = arith.constant 0 : index
      %85 = vector.load %arg4[%c0_44, %c0_45] : memref<8x128xf32, #tpu.memory_space<vmem>>, vector<8x128xf32>
      %86 = arith.truncf %84 : vector<8x128xf32> to vector<8x128xbf16>
      %87 = vector.shape_cast %86 : vector<8x128xbf16> to vector<8x1x128xbf16>
      %c0_46 = arith.constant 0 : index
      %c0_47 = arith.constant 0 : index
      %c0_48 = arith.constant 0 : index
      %88 = vector.load %arg2[%c0_46, %c0_47, %c0_48] : memref<8x128x128xbf16, #tpu.memory_space<vmem>>, vector<8x128x128xbf16>
      "tpu.trace_start"() <{level = 10 : i32, message = "bqk,btk->bqt"}> : () -> ()
      %cst_49 = arith.constant dense<0.000000e+00> : vector<8x1x128xf32>
      %89 = tpu.matmul %87, %88, %cst_49 {dimension_numbers = #tpu.dot_dimension_numbers<[2], [2], [1], [1], [0, 0, 0, 1, 1, 1], [0], [0]>} : vector<8x1x128xbf16>, vector<8x128x128xbf16>, vector<8x1x128xf32> -> vector<8x1x128xf32>
      "tpu.trace_stop"() : () -> ()
      %90 = vector.shape_cast %89 : vector<8x1x128xf32> to vector<8x128xf32>
      %cst_50 = arith.constant 0.000000e+00 : f32
      %91 = vector.broadcast %cst_50 : f32 to vector<8x128xf32>
      %92 = arith.cmpf ogt, %85, %91 : vector<8x128xf32>
      %cst_51 = arith.constant -1.000000e+30 : f32
      %93 = vector.broadcast %cst_51 : f32 to vector<8x128xf32>
      %94 = arith.select %92, %90, %93 : vector<8x128xi1>, vector<8x128xf32>
      %cst_52 = arith.constant dense<0xFF800000> : vector<8xf32>
      %95 = vector.multi_reduction <maximumf>, %94, %cst_52 [1] : vector<8x128xf32> to vector<8xf32>
      %96 = vector.shape_cast %95 : vector<8xf32> to vector<8x1xf32>
      %97 = vector.broadcast %96 : vector<8x1xf32> to vector<8x128xf32>
      %98 = arith.subf %94, %97 : vector<8x128xf32>
      %99 = math.exp %98 : vector<8x128xf32>
      %100 = arith.mulf %99, %85 : vector<8x128xf32>
      %cst_53 = arith.constant dense<0.000000e+00> : vector<8xf32>
      %101 = vector.multi_reduction <add>, %100, %cst_53 [1] : vector<8x128xf32> to vector<8xf32>
      %102 = vector.shape_cast %101 : vector<8xf32> to vector<8x1xf32>
      %103 = tpu.reciprocal %102 {approx = true} : vector<8x1xf32> -> vector<8x1xf32>
      %104 = vector.broadcast %103 : vector<8x1xf32> to vector<8x128xf32>
      %105 = arith.mulf %100, %104 : vector<8x128xf32>
      %106 = arith.truncf %105 : vector<8x128xf32> to vector<8x128xbf16>
      %107 = vector.shape_cast %106 : vector<8x128xbf16> to vector<8x1x128xbf16>
      %c0_54 = arith.constant 0 : index
      %c0_55 = arith.constant 0 : index
      %c0_56 = arith.constant 0 : index
      %108 = vector.load %arg3[%c0_54, %c0_55, %c0_56] : memref<8x128x128xbf16, #tpu.memory_space<vmem>>, vector<8x128x128xbf16>
      "tpu.trace_start"() <{level = 10 : i32, message = "bqt,btv->bqv"}> : () -> ()
      %cst_57 = arith.constant dense<0.000000e+00> : vector<8x1x128xf32>
      %109 = tpu.matmul %107, %108, %cst_57 {dimension_numbers = #tpu.dot_dimension_numbers<[2], [1], [1], [2], [0, 0, 0, 1, 1, 2], [0], [0]>} : vector<8x1x128xbf16>, vector<8x128x128xbf16>, vector<8x1x128xf32> -> vector<8x1x128xf32>
      "tpu.trace_stop"() : () -> ()
      %110 = vector.shape_cast %109 : vector<8x1x128xf32> to vector<8x128xf32>
      %111 = tpu.concatenate %84, %110 in 1 : vector<8x128xf32>, vector<8x128xf32> -> vector<8x256xf32>
      %112 = arith.truncf %111 : vector<8x256xf32> to vector<8x256xbf16>
      %c0_58 = arith.constant 0 : index
      %c0_59 = arith.constant 0 : index
      %113 = vector.load %arg9[%c0_58, %c0_59] : memref<256x128xbf16, #tpu.memory_space<vmem>>, vector<256x128xbf16>
      %cst_60 = arith.constant dense<0.000000e+00> : vector<8x128xf32>
      %114 = tpu.matmul %112, %113, %cst_60 {dimension_numbers = #tpu.dot_dimension_numbers<[1], [0], [0], [1], [0, 0, 1, 1], [], []>} : vector<8x256xbf16>, vector<256x128xbf16>, vector<8x128xf32> -> vector<8x128xf32>
      %c0_61 = arith.constant 0 : index
      %c0_62 = arith.constant 0 : index
      %115 = vector.load %arg10[%c0_61, %c0_62] : memref<1x128xf32, #tpu.memory_space<vmem>>, vector<1x128xf32>
      %116 = vector.broadcast %115 : vector<1x128xf32> to vector<8x128xf32>
      %117 = arith.addf %114, %116 : vector<8x128xf32>
      %118 = arith.index_cast %12 : i32 to index
      %c0_63 = arith.constant 0 : index
      %c0_64 = arith.constant 0 : index
      %119 = vector.load %arg11[%118, %c0_63, %c0_64] : memref<5x8x128xf32, #tpu.memory_space<vmem>>, vector<1x8x128xf32>
      %120 = vector.shape_cast %119 : vector<1x8x128xf32> to vector<8x128xf32>
      %121 = vector.shape_cast %117 : vector<8x128xf32> to vector<1x8x128xf32>
      tpu.vector_store %arg11[%118, %c0_63, %c0_64], %121 {strides = array<i32>} : memref<5x8x128xf32, #tpu.memory_space<vmem>>, vector<1x8x128xf32>,
      %122 = arith.index_cast %12 : i32 to index
      %c0_65 = arith.constant 0 : index
      %c0_66 = arith.constant 0 : index
      %123 = vector.load %arg12[%122, %c0_65, %c0_66] : memref<5x8x128xf32, #tpu.memory_space<vmem>>, vector<1x8x128xf32>
      %124 = vector.shape_cast %123 : vector<1x8x128xf32> to vector<8x128xf32>
      %125 = vector.shape_cast %105 : vector<8x128xf32> to vector<1x8x128xf32>
      tpu.vector_store %arg12[%122, %c0_65, %c0_66], %125 {strides = array<i32>} : memref<5x8x128xf32, #tpu.memory_space<vmem>>, vector<1x8x128xf32>,
      %c0_67 = arith.constant 0 : index
      %c0_68 = arith.constant 0 : index
      %126 = vector.load %arg13[%c0_67, %c0_68] : memref<8x128xf32, #tpu.memory_space<vmem>>, vector<8x128xf32>
      tpu.vector_store %arg13[%c0_67, %c0_68], %50 {strides = array<i32>} : memref<8x128xf32, #tpu.memory_space<vmem>>, vector<8x128xf32>,
      %c0_69 = arith.constant 0 : index
      %c0_70 = arith.constant 0 : index
      %127 = vector.load %arg14[%c0_69, %c0_70] : memref<8x128xf32, #tpu.memory_space<vmem>>, vector<8x128xf32>
      tpu.vector_store %arg14[%c0_69, %c0_70], %48 {strides = array<i32>} : memref<8x128xf32, #tpu.memory_space<vmem>>, vector<8x128xf32>,
      %c0_71 = arith.constant 0 : index
      %c0_72 = arith.constant 0 : index
      %128 = vector.load %arg15[%c0_71, %c0_72] : memref<8x128xf32, #tpu.memory_space<vmem>>, vector<8x128xf32>
      tpu.vector_store %arg15[%c0_71, %c0_72], %84 {strides = array<i32>} : memref<8x128xf32, #tpu.memory_space<vmem>>, vector<8x128xf32>,
      %c0_73 = arith.constant 0 : index
      %c0_74 = arith.constant 0 : index
      %129 = vector.load %arg16[%c0_73, %c0_74] : memref<8x128xf32, #tpu.memory_space<vmem>>, vector<8x128xf32>
      tpu.vector_store %arg16[%c0_73, %c0_74], %82 {strides = array<i32>} : memref<8x128xf32, #tpu.memory_space<vmem>>, vector<8x128xf32>,
      %c0_75 = arith.constant 0 : index
      %c0_76 = arith.constant 0 : index
      %130 = vector.load %arg17[%c0_75, %c0_76] : memref<8x128xf32, #tpu.memory_space<vmem>>, vector<8x128xf32>
      tpu.vector_store %arg17[%c0_75, %c0_76], %110 {strides = array<i32>} : memref<8x128xf32, #tpu.memory_space<vmem>>, vector<8x128xf32>,
    }
    %c5_i32_13 = arith.constant 5 : i32
    return
  }
  func.func @transform_0(%arg0: i32) -> (i32, i32, i32) {
    %c0_i32 = arith.constant 0 : i32
    %c0_i32_0 = arith.constant 0 : i32
    %c0_i32_1 = arith.constant 0 : i32
    return %c0_i32, %arg0, %c0_i32_0 : i32, i32, i32
  }
  func.func @transform_1(%arg0: i32) -> (i32, i32, i32) {
    %c0_i32 = arith.constant 0 : i32
    %c0_i32_0 = arith.constant 0 : i32
    %c0_i32_1 = arith.constant 0 : i32
    return %arg0, %c0_i32, %c0_i32_0 : i32, i32, i32
  }
  func.func @transform_2(%arg0: i32) -> (i32, i32, i32) {
    %c0_i32 = arith.constant 0 : i32
    %c0_i32_0 = arith.constant 0 : i32
    %c0_i32_1 = arith.constant 0 : i32
    return %arg0, %c0_i32, %c0_i32_0 : i32, i32, i32
  }
  func.func @transform_3(%arg0: i32) -> (i32, i32) {
    %c0_i32 = arith.constant 0 : i32
    %c0_i32_0 = arith.constant 0 : i32
    return %arg0, %c0_i32 : i32, i32
  }
  func.func @transform_4(%arg0: i32) -> (i32, i32) {
    %c0_i32 = arith.constant 0 : i32
    %c0_i32_0 = arith.constant 0 : i32
    %c0_i32_1 = arith.constant 0 : i32
    return %c0_i32, %c0_i32_0 : i32, i32
  }
  func.func @transform_5(%arg0: i32) -> (i32, i32) {
    %c0_i32 = arith.constant 0 : i32
    %c0_i32_0 = arith.constant 0 : i32
    %c0_i32_1 = arith.constant 0 : i32
    return %c0_i32, %c0_i32_0 : i32, i32
  }
  func.func @transform_6(%arg0: i32) -> (i32, i32) {
    %c0_i32 = arith.constant 0 : i32
    %c0_i32_0 = arith.constant 0 : i32
    %c0_i32_1 = arith.constant 0 : i32
    return %c0_i32, %c0_i32_0 : i32, i32
  }
  func.func @transform_7(%arg0: i32) -> (i32, i32) {
    %c0_i32 = arith.constant 0 : i32
    %c0_i32_0 = arith.constant 0 : i32
    %c0_i32_1 = arith.constant 0 : i32
    return %c0_i32, %c0_i32_0 : i32, i32
  }
  func.func @transform_8(%arg0: i32) -> (i32, i32) {
    %c0_i32 = arith.constant 0 : i32
    %c0_i32_0 = arith.constant 0 : i32
    %c0_i32_1 = arith.constant 0 : i32
    return %c0_i32, %c0_i32_0 : i32, i32
  }
  func.func @transform_9(%arg0: i32) -> (i32, i32) {
    %c0_i32 = arith.constant 0 : i32
    %c0_i32_0 = arith.constant 0 : i32
    %c0_i32_1 = arith.constant 0 : i32
    return %c0_i32, %c0_i32_0 : i32, i32
  }
  func.func @transform_10(%arg0: i32) -> (i32, i32, i32) {
    %c0_i32 = arith.constant 0 : i32
    %c0_i32_0 = arith.constant 0 : i32
    %c0_i32_1 = arith.constant 0 : i32
    return %c0_i32, %arg0, %c0_i32_0 : i32, i32, i32
  }
  func.func @transform_11(%arg0: i32) -> (i32, i32, i32) {
    %c0_i32 = arith.constant 0 : i32
    %c0_i32_0 = arith.constant 0 : i32
    %c0_i32_1 = arith.constant 0 : i32
    return %c0_i32, %arg0, %c0_i32_0 : i32, i32, i32
  }
}

</mosaic_0001>

<bundles_post_ra>
// kernel: tpu_custom_call.1
= control target key start
LH: loop header
LB: loop body
LE: loop exit
PB: predicated region body
PF: predicated region fallthrough
CT: control target
= control target key end

     0   :  { %17 = vsyncpa [#allocation8], 0  ;;  %s5318_s0 = inlined_call_operand.hbm [shape: f32[6,8,128], index: 0, kind: input, shape index: {}]   ;;  %s5319_s1 = inlined_call_operand.hbm [shape: bf16[8,128,128], index: 1, kind: input, shape index: {}]   ;;  %s5320_s2 = inlined_call_operand.hbm [shape: bf16[8,128,128], index: 2, kind: input, shape index: {}]   ;;  %s5321_s3 = inlined_call_operand.hbm [shape: f32[8,128], index: 3, kind: input, shape index: {}]   ;;  %s5322_s4 = inlined_call_operand.hbm [shape: bf16[384,512], index: 4, kind: input, shape index: {}]   ;;  %s5323_s5 = inlined_call_operand.vmem [shape: f32[1,512], index: 5, kind: input, shape index: {}]   ;;  %s5324_s6 = inlined_call_operand.hbm [shape: bf16[256,512], index: 6, kind: input, shape index: {}]   ;;  %s5325_s7 = inlined_call_operand.hbm [shape: f32[1,512], index: 7, kind: input, shape index: {}]   ;;  %s5326_s8 = inlined_call_operand.hbm [shape: bf16[256,128], index: 8, kind: input, shape index: {}]   ;;  %s5327_s9 = inlined_call_operand.vmem [shape: f32[1,128], index: 9, kind: input, shape index: {}]   ;;  %s5328_s10 = inlined_call_operand.hbm [shape: f32[5,8,128], index: 10, kind: output, shape index: {0}]   ;;  %s5329_s11 = inlined_call_operand.hbm [shape: f32[5,8,128], index: 11, kind: output, shape index: {1}]  }
   0x1   :  { %18 = vsyncpa [#allocation11], 0 }
   0x2   :  { %19 = vsyncpa [#allocation14], 0 }
   0x3   :  { %20 = vsyncpa [#allocation17], 0 }
   0x4   :  { %21 = vsyncpa [#allocation20], 0 }
   0x5   :  { %22 = vsyncpa [#allocation9], 0  ;;  %s41_s19 = sshll.u32 %s5319_s1, 4  ;;  %s42_s19 = int_to_ptr.hbm [resolvable:$true] %s41_s19 }
   0x6   :  { %23 = vsyncpa [#allocation23], 0  ;;  %s5024_s20 = smov [#allocation10]   ;;  %s68_s24 = sshll.u32 %s5321_s3, 4  ;;  %s69_s24 = int_to_ptr.hbm [resolvable:$true] %s68_s24 }
   0x7   :  { %s43_s21 = sshll.u32 %s5024_s20, 4  ;;  %s5025_s25 = smov 64   ;;  %s44_s21 = int_to_ptr.vmem [resolvable:$true] %s43_s21 }
   0x8   :  { %s5026_s26 = smov 4   ;;  %s5027_s27 = smov [#allocation13]  }
   0x9   :  { %49 = dma.hbm_to_vmem [thread:$0]  %s42_s19, 8192, %s44_s21, [#allocation11], %s5025_s25, %s5025_s25, %s5026_s26  }
   0xa   :  { %s70_s28 = sshll.u32 %s5027_s27, 4  ;;  %s93_s30 = sshll.u32 %s5324_s6, 4  ;;  %s71_s28 = int_to_ptr.vmem [resolvable:$true] %s70_s28  ;;  %s94_s30 = int_to_ptr.hbm [resolvable:$true] %s93_s30 }
   0xb   :  { %73 = dma.hbm_to_vmem [thread:$0]  %s69_s24, 128, %s71_s28, [#allocation14]  }
   0xc   :  { %s5028_s12 = smov [#allocation16]   ;;  %s28_s15 = sshll.u32 %s5318_s0, 4  ;;  %s29_s15 = int_to_ptr.hbm [resolvable:$true] %s28_s15 }
   0xd   :  { %s95_s13 = sshll.u32 %s5028_s12, 4  ;;  %s5029_s16 = smov 256   ;;  %s96_s13 = int_to_ptr.vmem [resolvable:$true] %s95_s13 }
   0xe   :  { %s5030_s17 = smov 16   ;;  %s5031_s18 = smov [#allocation7]  }
   0xf   :  { %101 = dma.hbm_to_vmem [thread:$0]  %s94_s30, 8192, %s96_s13, [#allocation17], %s5029_s16, %s5029_s16, %s5030_s17  }
  0x10   :  { %s30_s19 = sshll.u32 %s5031_s18, 4  ;;  %s5032_s20 = smov 128   ;;  %s31_s19 = int_to_ptr.vmem [resolvable:$true] %s30_s19 }
  0x11   :  { %s5033_s21 = smov 8   ;;  %s54_s23 = sshll.u32 %s5320_s2, 4  ;;  %s55_s23 = int_to_ptr.hbm [resolvable:$true] %s54_s23 }
  0x12   :  { %36 = dma.hbm_to_vmem [thread:$0]  %s29_s15, 768, %s31_s19, [#allocation8], %s5032_s20, %s5032_s20, %s5033_s21  }
  0x13   :  { %s5034_s24 = smov [#allocation12]   ;;  %s78_s1 = sshll.u32 %s5322_s4, 4  ;;  %s79_s1 = int_to_ptr.hbm [resolvable:$true] %s78_s1 }
  0x14   :  { %s56_s0 = sshll.u32 %s5034_s24, 4  ;;  %s5035_s29 = smov [#allocation15]   ;;  %s57_s0 = int_to_ptr.vmem [resolvable:$true] %s56_s0 }
  0x15   :  { %62 = dma.hbm_to_vmem [thread:$0]  %s55_s23, 8192, %s57_s0, [#allocation11], %s5025_s25, %s5025_s25, %s5026_s26  }
  0x16   :  { %s80_s30 = sshll.u32 %s5035_s29, 4  ;;  %s107_s3 = sshll.u32 %s5325_s7, 4  ;;  %s81_s30 = int_to_ptr.vmem [resolvable:$true] %s80_s30  ;;  %s108_s3 = int_to_ptr.hbm [resolvable:$true] %s107_s3 }
  0x17   :  { %86 = dma.hbm_to_vmem [thread:$0]  %s79_s1, 12288, %s81_s30, [#allocation14], %s5029_s16, %s5029_s16, %s5030_s17  }
  0x18   :  { %s117_s15 = sshll.u32 %s5326_s8, 4  ;;  %s5036_s18 = smov [#allocation18]   ;;  %s118_s15 = int_to_ptr.hbm [resolvable:$true] %s117_s15 }
  0x19   :  { %s109_s4 = sshll.u32 %s5036_s18, 4  ;;  %s5037_s19 = smov [#allocation19]   ;;  %s110_s4 = int_to_ptr.vmem [resolvable:$true] %s109_s4 }
  0x1a   :  { %112 = dma.hbm_to_vmem [thread:$0]  %s108_s3, 64, %s110_s4, [#allocation17]  }
  0x1b   :  { %s119_s6 = sshll.u32 %s5037_s19, 4  ;;  %s120_s6 = int_to_ptr.vmem [resolvable:$true] %s119_s6 }
  0x1c   :  { %125 = dma.hbm_to_vmem [thread:$0]  %s118_s15, 2048, %s120_s6, [#allocation20], %s5025_s25, %s5025_s25, %s5026_s26  }
  0x1d   :  { %5006 = dma.done.wait [#allocation8], 768  }
  0x1e   :  { %5007 = vsyncadd [#allocation8], 4294966528 }
  0x1f   :  { %5008 = dma.done.wait [#allocation11], 16384  }
  0x20   :  { %5009 = vsyncadd [#allocation11], 4294950912 }
  0x21   :  { %5010 = dma.done.wait [#allocation14], 12416  }
  0x22   :  { %5011 = vsyncadd [#allocation14], 4294954880 }
  0x23   :  { %5012 = dma.done.wait [#allocation17], 8256  }
  0x24   :  { %5013 = vsyncadd [#allocation17], 4294959040 }
  0x25   :  { %5014 = dma.done.wait [#allocation20], 2048  }
  0x26   :  { %5015 = vsyncadd [#allocation20], 4294965248  ;;  %v5038_v0 = vmov 0.0   ;;  %s5137_s7 = smov 0  }
  0x27   :  { %160 = vst [vmem:[#allocation2] sm:$0xff] %v5038_v0 }
  0x28   :  { %161 = vst [vmem:[#allocation3] sm:$0xff] %v5038_v0 }
  0x29   :  { %162 = vst [vmem:[#allocation4] sm:$0xff] %v5038_v0 }
  0x2a   :  { %163 = vst [vmem:[#allocation5] sm:$0xff] %v5038_v0 }
  0x2b   :  { %164 = vst [vmem:[#allocation6] sm:$0xff] %v5038_v0 }
  0x2c LB: > { %v3280_v1 = vld [vmem:[#allocation15 + $0xe0] sm:$0xf]  ;;  %v4426_v2 = vld [vmem:[#allocation15 + $0xec] sm:$0xf0]  ;;  %v4424_v10 = vld [vmem:[#allocation15 + $0xe4] sm:$0xf]  ;;  %s5022_s7 = sphi %s5137_s7, %s170_s7  }
  0x2d   : > { %v3408_v3 = vld [vmem:[#allocation15 + $0x1e0] sm:$0xf]  ;;  %v3281_v4 = vor.u32 %v4426_v2, %v3280_v1  ;;  %v4458_v5 = vld [vmem:[#allocation15 + $0x1ec] sm:$0xf0]  ;;  %v3282_v11 = vld [vmem:[#allocation15 + $0xf0] sm:$0xf0] }
  0x2e   : > { %v3536_v6 = vld [vmem:[#allocation15 + $0x2e0] sm:$0xf]  ;;  %v4490_v7 = vld [vmem:[#allocation15 + $0x2ec] sm:$0xf0]  ;;  %v3409_v8 = vor.u32 %v4458_v5, %v3408_v3  ;;  %v3285_v13 = vor.u32 %v4424_v10, %v3282_v11  ;;  %v4420_v21 = vld [vmem:[#allocation15 + $0xc4] sm:$0xf] }
  0x2f   : > { %v3537_v9 = vor.u32 %v4490_v7, %v3536_v6  ;;  %v3264_v12 = vld [vmem:[#allocation15 + $0xc0] sm:$0xf]  ;;  %765 = vmatpush.bf16.msra.mxu0 %v3281_v4  ;;  %v4422_v14 = vld [vmem:[#allocation15 + $0xcc] sm:$0xf0]  ;;  %v3266_v23 = vld [vmem:[#allocation15 + $0xd0] sm:$0xf0] }
  0x30   : > { %v3392_v15 = vld [vmem:[#allocation15 + $0x1c0] sm:$0xf]  ;;  %v4454_v16 = vld [vmem:[#allocation15 + $0x1cc] sm:$0xf0]  ;;  %778 = vmatpush.bf16.msra.mxu1 %v3409_v8  ;;  %v3265_v17 = vor.u32 %v4422_v14, %v3264_v12  ;;  %804 = vmatpush.bf16.msra.mxu3 %v3285_v13  ;;  %v3269_v26 = vor.u32 %v4420_v21, %v3266_v23  ;;  %v4416_v32 = vld [vmem:[#allocation15 + $0xa4] sm:$0xf] }
  0x31   : > { %791 = vmatpush.bf16.msra.mxu2 %v3537_v9  ;;  %v3393_v18 = vor.u32 %v4454_v16, %v3392_v15  ;;  %v3520_v19 = vld [vmem:[#allocation15 + $0x2c0] sm:$0xf]  ;;  %v4486_v20 = vld [vmem:[#allocation15 + $0x2cc] sm:$0xf0]  ;;  %v3250_v33 = vld [vmem:[#allocation15 + $0xb0] sm:$0xf0] }
  0x32   : > { %v3521_v22 = vor.u32 %v4486_v20, %v3520_v19  ;;  %v3248_v24 = vld [vmem:[#allocation15 + $0xa0] sm:$0xf]  ;;  %v4418_v25 = vld [vmem:[#allocation15 + $0xac] sm:$0xf0]  ;;  %v3253_v39 = vor.u32 %v4416_v32, %v3250_v33  ;;  %v4412_v43 = vld [vmem:[#allocation15 + $0x84] sm:$0xf] }
  0x33   : > { %v3376_v27 = vld [vmem:[#allocation15 + $0x1a0] sm:$0xf]  ;;  %v4450_v28 = vld [vmem:[#allocation15 + $0x1ac] sm:$0xf0]  ;;  %766 = vmatpush.bf16.msra.mxu0 %v3265_v17  ;;  %v3249_v30 = vor.u32 %v4418_v25, %v3248_v24  ;;  %v3234_v44 = vld [vmem:[#allocation15 + $0x90] sm:$0xf0] }
  0x34   : > { %v3504_v29 = vld [vmem:[#allocation15 + $0x2a0] sm:$0xf]  ;;  %v4482_v31 = vld [vmem:[#allocation15 + $0x2ac] sm:$0xf0]  ;;  %779 = vmatpush.bf16.msra.mxu1 %v3393_v18  ;;  %v3377_v34 = vor.u32 %v4450_v28, %v3376_v27  ;;  %805 = vmatpush.bf16.msra.mxu3 %v3269_v26  ;;  %v3237_v51 = vor.u32 %v4412_v43, %v3234_v44  ;;  %v4408_v55 = vld [vmem:[#allocation15 + $0x64] sm:$0xf] }
  0x35   : > { %792 = vmatpush.bf16.msra.mxu2 %v3521_v22  ;;  %v3505_v35 = vor.u32 %v4482_v31, %v3504_v29  ;;  %v3232_v36 = vld [vmem:[#allocation15 + $0x80] sm:$0xf]  ;;  %v4414_v37 = vld [vmem:[#allocation15 + $0x8c] sm:$0xf0]  ;;  %v3218_v56 = vld [vmem:[#allocation15 + $0x70] sm:$0xf0] }
  0x36   : > { %v3360_v38 = vld [vmem:[#allocation15 + $0x180] sm:$0xf]  ;;  %v4446_v40 = vld [vmem:[#allocation15 + $0x18c] sm:$0xf0]  ;;  %v3233_v45 = vor.u32 %v4414_v37, %v3232_v36  ;;  %v3221_v63 = vor.u32 %v4408_v55, %v3218_v56  ;;  %v4404_v3 = vld [vmem:[#allocation15 + $0x44] sm:$0xf] }
  0x37   : > { %v3488_v41 = vld [vmem:[#allocation15 + $0x280] sm:$0xf]  ;;  %v4478_v42 = vld [vmem:[#allocation15 + $0x28c] sm:$0xf0]  ;;  %767 = vmatpush.bf16.msra.mxu0 %v3249_v30  ;;  %v3361_v46 = vor.u32 %v4446_v40, %v3360_v38  ;;  %v3202_v4 = vld [vmem:[#allocation15 + $0x50] sm:$0xf0] }
  0x38   : > { %780 = vmatpush.bf16.msra.mxu1 %v3377_v34  ;;  %v3489_v47 = vor.u32 %v4478_v42, %v3488_v41  ;;  %v3216_v48 = vld [vmem:[#allocation15 + $0x60] sm:$0xf]  ;;  %v4410_v49 = vld [vmem:[#allocation15 + $0x6c] sm:$0xf0]  ;;  %806 = vmatpush.bf16.msra.mxu3 %v3253_v39  ;;  %v3205_v11 = vor.u32 %v4404_v3, %v3202_v4  ;;  %v4400_v15 = vld [vmem:[#allocation15 + $0x24] sm:$0xf] }
  0x39   : > { %793 = vmatpush.bf16.msra.mxu2 %v3505_v35  ;;  %v3344_v50 = vld [vmem:[#allocation15 + $0x160] sm:$0xf]  ;;  %v4442_v52 = vld [vmem:[#allocation15 + $0x16c] sm:$0xf0]  ;;  %v3217_v57 = vor.u32 %v4410_v49, %v3216_v48  ;;  %v3186_v16 = vld [vmem:[#allocation15 + $0x30] sm:$0xf0] }
  0x3a   : > { %v3472_v53 = vld [vmem:[#allocation15 + $0x260] sm:$0xf]  ;;  %v4474_v54 = vld [vmem:[#allocation15 + $0x26c] sm:$0xf0]  ;;  %v3345_v58 = vor.u32 %v4442_v52, %v3344_v50  ;;  %v3189_v25 = vor.u32 %v4400_v15, %v3186_v16  ;;  %v4396_v27 = vld [vmem:[#allocation15 + $0x4] sm:$0xf] }
  0x3b   : > { %768 = vmatpush.bf16.msra.mxu0 %v3233_v45  ;;  %v3473_v59 = vor.u32 %v4474_v54, %v3472_v53  ;;  %v3200_v60 = vld [vmem:[#allocation15 + $0x40] sm:$0xf]  ;;  %v4406_v61 = vld [vmem:[#allocation15 + $0x4c] sm:$0xf0]  ;;  %v3170_v28 = vld [vmem:[#allocation15 + $0x10] sm:$0xf0] }
  0x3c   : > { %781 = vmatpush.bf16.msra.mxu1 %v3361_v46  ;;  %v3328_v62 = vld [vmem:[#allocation15 + $0x140] sm:$0xf]  ;;  %807 = vmatpush.bf16.msra.mxu3 %v3237_v51  ;;  %v4438_v0 = vld [vmem:[#allocation15 + $0x14c] sm:$0xf0]  ;;  %v3201_v5 = vor.u32 %v4406_v61, %v3200_v60  ;;  %v4456_v29 = vld [vmem:[#allocation15 + $0x1e4] sm:$0xf]  ;;  %v3173_v40 = vor.u32 %v4396_v27, %v3170_v28 }
  0x3d   : > { %794 = vmatpush.bf16.msra.mxu2 %v3489_v47  ;;  %v3456_v1 = vld [vmem:[#allocation15 + $0x240] sm:$0xf]  ;;  %v4470_v2 = vld [vmem:[#allocation15 + $0x24c] sm:$0xf0]  ;;  %v3329_v6 = vor.u32 %v4438_v0, %v3328_v62  ;;  %v3410_v30 = vld [vmem:[#allocation15 + $0x1f0] sm:$0xf0] }
  0x3e   : > { %v3457_v7 = vor.u32 %v4470_v2, %v3456_v1  ;;  %v3184_v8 = vld [vmem:[#allocation15 + $0x20] sm:$0xf]  ;;  %v4402_v9 = vld [vmem:[#allocation15 + $0x2c] sm:$0xf0]  ;;  %v4488_v31 = vld [vmem:[#allocation15 + $0x2e4] sm:$0xf]  ;;  %v3413_v41 = vor.u32 %v4456_v29, %v3410_v30 }
  0x3f   : > { %769 = vmatpush.bf16.msra.mxu0 %v3217_v57  ;;  %v3312_v10 = vld [vmem:[#allocation15 + $0x120] sm:$0xf]  ;;  %v4434_v12 = vld [vmem:[#allocation15 + $0x12c] sm:$0xf0]  ;;  %v3185_v17 = vor.u32 %v4402_v9, %v3184_v8  ;;  %v3538_v33 = vld [vmem:[#allocation15 + $0x2f0] sm:$0xf0] }
  0x40   : > { %782 = vmatpush.bf16.msra.mxu1 %v3345_v58  ;;  %808 = vmatpush.bf16.msra.mxu3 %v3221_v63  ;;  %v3440_v13 = vld [vmem:[#allocation15 + $0x220] sm:$0xf]  ;;  %v4466_v14 = vld [vmem:[#allocation15 + $0x22c] sm:$0xf0]  ;;  %v3313_v20 = vor.u32 %v4434_v12, %v3312_v10  ;;  %v3288_v34 = vld [vmem:[#allocation15 + $0xe8] sm:$0xf]  ;;  %v3541_v42 = vor.u32 %v4488_v31, %v3538_v33 }
  0x41   : > { %795 = vmatpush.bf16.msra.mxu2 %v3473_v59  ;;  %v3168_v18 = vld [vmem:[#allocation15] sm:$0xf]  ;;  %v4398_v19 = vld [vmem:[#allocation15 + $0xc] sm:$0xf0]  ;;  %v3441_v21 = vor.u32 %v4466_v14, %v3440_v13  ;;  %v4427_v35 = vld [vmem:[#allocation15 + $0xf4] sm:$0xf0] }
  0x42   : > { %v3296_v22 = vld [vmem:[#allocation15 + $0x100] sm:$0xf]  ;;  %v4430_v23 = vld [vmem:[#allocation15 + $0x10c] sm:$0xf0]  ;;  %v3169_v32 = vor.u32 %v4398_v19, %v3168_v18  ;;  %v3416_v38 = vld [vmem:[#allocation15 + $0x1e8] sm:$0xf]  ;;  %v3289_v43 = vor.u32 %v4427_v35, %v3288_v34 }
  0x43   : > { %770 = vmatpush.bf16.msra.mxu0 %v3201_v5  ;;  %v3424_v24 = vld [vmem:[#allocation15 + $0x200] sm:$0xf]  ;;  %v4462_v26 = vld [vmem:[#allocation15 + $0x20c] sm:$0xf0]  ;;  %v3297_v36 = vor.u32 %v4430_v23, %v3296_v22  ;;  %v4459_v39 = vld [vmem:[#allocation15 + $0x1f4] sm:$0xf0] }
  0x44   : > { %783 = vmatpush.bf16.msra.mxu1 %v3329_v6  ;;  %809 = vmatpush.bf16.msra.mxu3 %v3205_v11  ;;  %v3425_v37 = vor.u32 %v4462_v26, %v3424_v24  ;;  %v4452_v44 = vld [vmem:[#allocation15 + $0x1c4] sm:$0xf]  ;;  %v3394_v45 = vld [vmem:[#allocation15 + $0x1d0] sm:$0xf0]  ;;  %v3417_v47 = vor.u32 %v4459_v39, %v3416_v38  ;;  %v3272_v49 = vld [vmem:[#allocation15 + $0xc8] sm:$0xf] }
  0x45   : > { %796 = vmatpush.bf16.msra.mxu2 %v3457_v7  ;;  %v4484_v46 = vld [vmem:[#allocation15 + $0x2c4] sm:$0xf]  ;;  %v3522_v48 = vld [vmem:[#allocation15 + $0x2d0] sm:$0xf0]  ;;  %v4423_v50 = vld [vmem:[#allocation15 + $0xd4] sm:$0xf0]  ;;  %v3397_v54 = vor.u32 %v4452_v44, %v3394_v45 }
  0x46   : > { %v3400_v51 = vld [vmem:[#allocation15 + $0x1c8] sm:$0xf]  ;;  %v4455_v52 = vld [vmem:[#allocation15 + $0x1d4] sm:$0xf0]  ;;  %s5143_s8 = sshll.u32 %s5022_s7, 3  ;;  %v175_v53 = vld [vmem:[#allocation2] sm:$0xff]  ;;  %v3525_v58 = vor.u32 %v4484_v46, %v3522_v48  ;;  %v3273_v59 = vor.u32 %v4423_v50, %v3272_v49 }
  0x47   : > { %771 = vmatpush.bf16.msra.mxu0 %v3185_v17  ;;  %v4448_v55 = vld [vmem:[#allocation15 + $0x1a4] sm:$0xf]  ;;  %v5145_v56 = vpack.c.bf16 %v175_v53, %v175_v53  ;;  %v3378_v60 = vld [vmem:[#allocation15 + $0x1b0] sm:$0xf0]  ;;  %s172_s25 = scalar_lea.vmem [#allocation7], %s5143_s8  ;;  %v3401_v0 = vor.u32 %v4455_v52, %v3400_v51  ;;  %s3106_s17 = scalar_lea.vmem [#allocation22], %s5143_s8 }
  0x48   : > { %784 = vmatpush.bf16.msra.mxu1 %v3313_v20  ;;  %810 = vmatpush.bf16.msra.mxu3 %v3189_v25  ;;  %v174_v57 = vld [vmem:[#allocation6] sm:$0xff]  ;;  %v3506_v1 = vld [vmem:[#allocation15 + $0x2b0] sm:$0xf0]  ;;  %v3256_v2 = vld [vmem:[#allocation15 + $0xa8] sm:$0xf]  ;;  %v3381_v7 = vor.u32 %v4448_v55, %v3378_v60  ;;  %s3104_s24 = scalar_lea.vmem [#allocation21], %s5143_s8 }
  0x49   : > { %797 = vmatpush.bf16.msra.mxu2 %v3441_v21  ;;  %v4480_v61 = vld [vmem:[#allocation15 + $0x2a4] sm:$0xf]  ;;  %v5148_v63 = vpack.c.bf16 %v174_v57, %v174_v57  ;;  %v4419_v3 = vld [vmem:[#allocation15 + $0xb4] sm:$0xf0]  ;;  %v3384_v5 = vld [vmem:[#allocation15 + $0x1a8] sm:$0xf] }
  0x4a   : > { %v173_v62 = vld [vmem:[%s172_s25] sm:$0xff]  ;;  %v4451_v6 = vld [vmem:[#allocation15 + $0x1b4] sm:$0xf0]  ;;  %v3509_v8 = vor.u32 %v4480_v61, %v3506_v1  ;;  %v3257_v9 = vor.u32 %v4419_v3, %v3256_v2  ;;  %v3362_v11 = vld [vmem:[#allocation15 + $0x190] sm:$0xf0]  ;;  %s170_s7 = sadd.s32 1, %s5022_s7  }
  0x4b   : > { %772 = vmatpush.bf16.msra.mxu0 %v3169_v32  ;;  %v5150_v4 = vpack.c.bf16 %v173_v62, %v173_v62  ;;  %v4444_v10 = vld [vmem:[#allocation15 + $0x184] sm:$0xf]  ;;  %v3385_v13 = vor.u32 %v4451_v6, %v3384_v5  ;;  %v3490_v14 = vld [vmem:[#allocation15 + $0x290] sm:$0xf0]  ;;  %v3240_v15 = vld [vmem:[#allocation15 + $0x88] sm:$0xf] }
  0x4c   : > { %785 = vmatpush.bf16.msra.mxu1 %v3297_v36  ;;  %811 = vmatpush.bf16.msra.mxu3 %v3173_v40  ;;  %v4476_v12 = vld [vmem:[#allocation15 + $0x284] sm:$0xf]  ;;  %v4415_v16 = vld [vmem:[#allocation15 + $0x94] sm:$0xf0]  ;;  %v3368_v17 = vld [vmem:[#allocation15 + $0x188] sm:$0xf]  ;;  %v3365_v19 = vor.u32 %v4444_v10, %v3362_v11 }
  0x4d   : > { %798 = vmatpush.bf16.msra.mxu2 %v3425_v37  ;;  %v4447_v18 = vld [vmem:[#allocation15 + $0x194] sm:$0xf0]  ;;  %v3493_v20 = vor.u32 %v4476_v12, %v3490_v14  ;;  %v3241_v21 = vor.u32 %v4415_v16, %v3240_v15  ;;  %v4440_v22 = vld [vmem:[#allocation15 + $0x164] sm:$0xf]  ;;  %v3346_v23 = vld [vmem:[#allocation15 + $0x170] sm:$0xf0] }
  0x4e   : > { %773 = vmatmul.bf16.vlgmr.msra.gmra.mxu0 %v5150_v4  ;;  %v4472_v24 = vld [vmem:[#allocation15 + $0x264] sm:$0xf]  ;;  %v3369_v25 = vor.u32 %v4447_v18, %v3368_v17  ;;  %v3474_v26 = vld [vmem:[#allocation15 + $0x270] sm:$0xf0]  ;;  %v3224_v27 = vld [vmem:[#allocation15 + $0x68] sm:$0xf]  ;;  %v3349_v31 = vor.u32 %v4440_v22, %v3346_v23 }
  0x4f   : > { %817 = vmatpush.bf16.msrb.mxu0 %v3413_v41  ;;  %786 = vmatmul.bf16.vlgmr.msra.gmra.mxu1 %v5148_v63  ;;  %v4411_v28 = vld [vmem:[#allocation15 + $0x74] sm:$0xf0]  ;;  %v3352_v29 = vld [vmem:[#allocation15 + $0x168] sm:$0xf]  ;;  %v3477_v32 = vor.u32 %v4472_v24, %v3474_v26  ;;  %v4436_v34 = vld [vmem:[#allocation15 + $0x144] sm:$0xf] }
  0x50   : > { %830 = vmatpush.bf16.msrb.mxu1 %v3541_v42  ;;  %856 = vmatpush.bf16.msrb.mxu3 %v3417_v47  ;;  %v4443_v30 = vld [vmem:[#allocation15 + $0x174] sm:$0xf0]  ;;  %v3225_v33 = vor.u32 %v4411_v28, %v3224_v27  ;;  %v3330_v35 = vld [vmem:[#allocation15 + $0x150] sm:$0xf0]  ;;  %v4468_v36 = vld [vmem:[#allocation15 + $0x244] sm:$0xf] }
  0x51   : > { %843 = vmatpush.bf16.msrb.mxu2 %v3289_v43  ;;  %812 = vmatmul.bf16.vlgmr.msra.gmra.mxu3 %v5150_v4  ;;  %v3353_v37 = vor.u32 %v4443_v30, %v3352_v29  ;;  %v3458_v38 = vld [vmem:[#allocation15 + $0x250] sm:$0xf0]  ;;  %v3208_v39 = vld [vmem:[#allocation15 + $0x48] sm:$0xf]  ;;  %v4407_v40 = vld [vmem:[#allocation15 + $0x54] sm:$0xf0]  ;;  %v3333_v43 = vor.u32 %v4436_v34, %v3330_v35 }
  0x52   : > { %799 = vmatmul.bf16.vlgmr.msra.gmra.mxu2 %v5145_v56  ;;  %v3336_v41 = vld [vmem:[#allocation15 + $0x148] sm:$0xf]  ;;  %v4439_v42 = vld [vmem:[#allocation15 + $0x154] sm:$0xf0]  ;;  %v3461_v44 = vor.u32 %v4468_v36, %v3458_v38  ;;  %v3209_v45 = vor.u32 %v4407_v40, %v3208_v39  ;;  %v4432_v46 = vld [vmem:[#allocation15 + $0x124] sm:$0xf] }
  0x53   : > { %818 = vmatpush.bf16.msrb.mxu0 %v3397_v54  ;;  %v3314_v47 = vld [vmem:[#allocation15 + $0x130] sm:$0xf0]  ;;  %v4464_v48 = vld [vmem:[#allocation15 + $0x224] sm:$0xf]  ;;  %v3337_v49 = vor.u32 %v4439_v42, %v3336_v41  ;;  %v3192_v51 = vld [vmem:[#allocation15 + $0x28] sm:$0xf] }
  0x54   : > { %831 = vmatpush.bf16.msrb.mxu1 %v3525_v58  ;;  %857 = vmatpush.bf16.msrb.mxu3 %v3401_v0  ;;  %v3442_v50 = vld [vmem:[#allocation15 + $0x230] sm:$0xf0]  ;;  %v4403_v52 = vld [vmem:[#allocation15 + $0x34] sm:$0xf0]  ;;  %v3320_v53 = vld [vmem:[#allocation15 + $0x128] sm:$0xf]  ;;  %v3317_v55 = vor.u32 %v4432_v46, %v3314_v47 }
  0x55   : > { %844 = vmatpush.bf16.msrb.mxu2 %v3273_v59  ;;  %v4435_v54 = vld [vmem:[#allocation15 + $0x134] sm:$0xf0]  ;;  %v4428_v57 = vld [vmem:[#allocation15 + $0x104] sm:$0xf]  ;;  %v3298_v58 = vld [vmem:[#allocation15 + $0x110] sm:$0xf0]  ;;  %v3445_v59 = vor.u32 %v4464_v48, %v3442_v50  ;;  %v3193_v60 = vor.u32 %v4403_v52, %v3192_v51 }
  0x56   : > { %v4460_v61 = vld [vmem:[#allocation15 + $0x204] sm:$0xf]  ;;  %v3426_v62 = vld [vmem:[#allocation15 + $0x210] sm:$0xf0]  ;;  %v3176_v0 = vld [vmem:[#allocation15 + $0x8] sm:$0xf]  ;;  %v3321_v1 = vor.u32 %v4435_v54, %v3320_v53 }
  0x57   : > { %819 = vmatpush.bf16.msrb.mxu0 %v3381_v7  ;;  %v4399_v2 = vld [vmem:[#allocation15 + $0x14] sm:$0xf0]  ;;  %v3304_v3 = vld [vmem:[#allocation15 + $0x108] sm:$0xf]  ;;  %v3290_v10 = vld [vmem:[#allocation15 + $0xf8] sm:$0xf0] }
  0x58   : > { %832 = vmatpush.bf16.msrb.mxu1 %v3509_v8  ;;  %858 = vmatpush.bf16.msrb.mxu3 %v3385_v13  ;;  %v4431_v5 = vld [vmem:[#allocation15 + $0x114] sm:$0xf0]  ;;  %v3544_v6 = vld [vmem:[#allocation15 + $0x2e8] sm:$0xf]  ;;  %v4425_v8 = vld [vmem:[#allocation15 + $0xec] sm:$0xf]  ;;  %v3429_v13 = vor.u32 %v4460_v61, %v3426_v62  ;;  %v3177_v14 = vor.u32 %v4399_v2, %v3176_v0 }
  0x59   : > { %845 = vmatpush.bf16.msrb.mxu2 %v3257_v9  ;;  %v4491_v7 = vld [vmem:[#allocation15 + $0x2f4] sm:$0xf0]  ;;  %v3301_v9 = vor.u32 %v4428_v57, %v3298_v58  ;;  %v4457_v11 = vld [vmem:[#allocation15 + $0x1ec] sm:$0xf]  ;;  %v3418_v12 = vld [vmem:[#allocation15 + $0x1f8] sm:$0xf0]  ;;  %v3305_v17 = vor.u32 %v4431_v5, %v3304_v3 }
  0x5a   : > { %v4489_v15 = vld [vmem:[#allocation15 + $0x2ec] sm:$0xf]  ;;  %v3546_v16 = vld [vmem:[#allocation15 + $0x2f8] sm:$0xf0]  ;;  %v3545_v18 = vor.u32 %v4491_v7, %v3544_v6  ;;  %v4487_v22 = vld [vmem:[#allocation15 + $0x2d4] sm:$0xf0] }
  0x5b   : > { %820 = vmatpush.bf16.msrb.mxu0 %v3365_v19  ;;  %v3293_v19 = vor.u32 %v4425_v8, %v3290_v10  ;;  %v4421_v23 = vld [vmem:[#allocation15 + $0xcc] sm:$0xf]  ;;  %v3549_v24 = vor.u32 %v4489_v15, %v3546_v16  ;;  %v3402_v27 = vld [vmem:[#allocation15 + $0x1d8] sm:$0xf0]  ;;  %v4483_v34 = vld [vmem:[#allocation15 + $0x2b4] sm:$0xf0] }
  0x5c   : > { %833 = vmatpush.bf16.msrb.mxu1 %v3493_v20  ;;  %859 = vmatpush.bf16.msrb.mxu3 %v3369_v25  ;;  %v3421_v20 = vor.u32 %v4457_v11, %v3418_v12  ;;  %v3274_v25 = vld [vmem:[#allocation15 + $0xd8] sm:$0xf0]  ;;  %v4453_v26 = vld [vmem:[#allocation15 + $0x1cc] sm:$0xf]  ;;  %v4479_v46 = vld [vmem:[#allocation15 + $0x294] sm:$0xf0] }
  0x5d   : > { %846 = vmatpush.bf16.msrb.mxu2 %v3241_v21  ;;  %v3528_v21 = vld [vmem:[#allocation15 + $0x2c8] sm:$0xf]  ;;  %v4485_v28 = vld [vmem:[#allocation15 + $0x2cc] sm:$0xf]  ;;  %v3530_v29 = vld [vmem:[#allocation15 + $0x2d8] sm:$0xf0] }
  0x5e   : > { %v3529_v30 = vor.u32 %v4487_v22, %v3528_v21  ;;  %v4417_v35 = vld [vmem:[#allocation15 + $0xac] sm:$0xf]  ;;  %v3258_v36 = vld [vmem:[#allocation15 + $0xb8] sm:$0xf0]  ;;  %v3480_v58 = vld [vmem:[#allocation15 + $0x268] sm:$0xf] }
  0x5f   : > { %821 = vmatpush.bf16.msrb.mxu0 %v3349_v31  ;;  %v3512_v31 = vld [vmem:[#allocation15 + $0x2a8] sm:$0xf]  ;;  %v4449_v38 = vld [vmem:[#allocation15 + $0x1ac] sm:$0xf]  ;;  %v3386_v39 = vld [vmem:[#allocation15 + $0x1b8] sm:$0xf0] }
  0x60   : > { %834 = vmatpush.bf16.msrb.mxu1 %v3477_v32  ;;  %860 = vmatpush.bf16.msrb.mxu3 %v3353_v37  ;;  %v3277_v32 = vor.u32 %v4421_v23, %v3274_v25  ;;  %v3533_v37 = vor.u32 %v4485_v28, %v3530_v29  ;;  %v4481_v40 = vld [vmem:[#allocation15 + $0x2ac] sm:$0xf]  ;;  %v3514_v41 = vld [vmem:[#allocation15 + $0x2b8] sm:$0xf0]  ;;  %v3513_v42 = vor.u32 %v4483_v34, %v3512_v31  ;;  %v3464_v8 = vld [vmem:[#allocation15 + $0x248] sm:$0xf] }
  0x61   : > { %847 = vmatpush.bf16.msrb.mxu2 %v3225_v33  ;;  %v3405_v33 = vor.u32 %v4453_v26, %v3402_v27  ;;  %v4413_v47 = vld [vmem:[#allocation15 + $0x8c] sm:$0xf]  ;;  %v3517_v48 = vor.u32 %v4481_v40, %v3514_v41  ;;  %v3370_v51 = vld [vmem:[#allocation15 + $0x198] sm:$0xf0]  ;;  %v4467_v21 = vld [vmem:[#allocation15 + $0x234] sm:$0xf0] }
  0x62   : > { %v4445_v50 = vld [vmem:[#allocation15 + $0x18c] sm:$0xf]  ;;  %v3498_v53 = vld [vmem:[#allocation15 + $0x298] sm:$0xf0]  ;;  %p167_p0 = scmp.ge.s32.totalorder %s170_s7, 5  }
  0x63   : > { %822 = vmatpush.bf16.msrb.mxu0 %v3333_v43  ;;  %v3261_v43 = vor.u32 %v4417_v35, %v3258_v36  ;;  %v4477_v52 = vld [vmem:[#allocation15 + $0x28c] sm:$0xf]  ;;  %v3373_v57 = vor.u32 %v4445_v50, %v3370_v51  ;;  %v3226_v62 = vld [vmem:[#allocation15 + $0x78] sm:$0xf0]  ;;  %s3119_s28 = sshll.u32 (%p167_p0), %s5328_s10, 4  ;;  %s5039_s1 = smov (%p167_p0), [#allocation21]   ;;  %s3120_s28 = int_to_ptr.hbm [resolvable:$true] %s3119_s28 }
  0x64   : > { %835 = vmatpush.bf16.msrb.mxu1 %v3461_v44  ;;  %861 = vmatpush.bf16.msrb.mxu3 %v3337_v49  ;;  %v3389_v44 = vor.u32 %v4449_v38, %v3386_v39  ;;  %v3242_v49 = vld [vmem:[#allocation15 + $0x98] sm:$0xf0]  ;;  %v3501_v61 = vor.u32 %v4477_v52, %v3498_v53  ;;  %v4441_v0 = vld [vmem:[#allocation15 + $0x16c] sm:$0xf]  ;;  %s3117_s29 = sshll.u32 (%p167_p0), %s5039_s1, 4  ;;  %s5040_s30 = smov (%p167_p0), [#allocation22]   ;;  %s3118_s29 = int_to_ptr.vmem [resolvable:$true] %s3117_s29 }
  0x65   : > { %848 = vmatpush.bf16.msrb.mxu2 %v3209_v45  ;;  %v3496_v45 = vld [vmem:[#allocation15 + $0x288] sm:$0xf]  ;;  %v4473_v2 = vld [vmem:[#allocation15 + $0x26c] sm:$0xf]  ;;  %v3482_v3 = vld [vmem:[#allocation15 + $0x278] sm:$0xf0] }
  0x66   : > { %v3497_v54 = vor.u32 %v4479_v46, %v3496_v45  ;;  %v4405_v10 = vld [vmem:[#allocation15 + $0x4c] sm:$0xf]  ;;  %v3485_v11 = vor.u32 %v4473_v2, %v3482_v3  ;;  %v3210_v12 = vld [vmem:[#allocation15 + $0x58] sm:$0xf0]  ;;  %v5167_v46 = vld [vmem:[%s5323_s5] sm:$0xf] }
  0x67   : > { %823 = vmatpush.bf16.msrb.mxu0 %v3317_v55  ;;  %v3245_v55 = vor.u32 %v4413_v47, %v3242_v49  ;;  %v4469_v15 = vld [vmem:[#allocation15 + $0x24c] sm:$0xf]  ;;  %v3466_v16 = vld [vmem:[#allocation15 + $0x258] sm:$0xf0]  ;;  %v4522_v2 = vld [vmem:[#allocation16 + $0xec] sm:$0xf0] }
  0x68   : > { %836 = vmatpush.bf16.msrb.mxu1 %v3445_v59  ;;  %862 = vmatpush.bf16.msrb.mxu3 %v3321_v1  ;;  %v4475_v59 = vld [vmem:[#allocation15 + $0x274] sm:$0xf0]  ;;  %v3354_v1 = vld [vmem:[#allocation15 + $0x178] sm:$0xf0]  ;;  %v4401_v22 = vld [vmem:[#allocation15 + $0x2c] sm:$0xf]  ;;  %v3469_v23 = vor.u32 %v4469_v15, %v3466_v16 }
  0x69   : > { %849 = vmatpush.bf16.msrb.mxu2 %v3193_v60  ;;  %v4409_v60 = vld [vmem:[#allocation15 + $0x6c] sm:$0xf]  ;;  %v3481_v5 = vor.u32 %v4475_v59, %v3480_v58  ;;  %v3357_v7 = vor.u32 %v4441_v0, %v3354_v1  ;;  %v3322_v26 = vld [vmem:[#allocation15 + $0x138] sm:$0xf0]  ;;  %v3667_v1 = vld [vmem:[#allocation16 + $0xe0] sm:$0xf] }
  0x6a   : > { %v3229_v6 = vor.u32 %v4409_v60, %v3226_v62  ;;  %v4433_v25 = vld [vmem:[#allocation15 + $0x12c] sm:$0xf]  ;;  %v3450_v28 = vld [vmem:[#allocation15 + $0x238] sm:$0xf0]  ;;  %v278_v60 = vperm.slane %v5167_v46, 1  ;;  %s3130_s12 = sshll.u32 (%p167_p0), %s5040_s30, 4  ;;  %s3131_s12 = int_to_ptr.vmem [resolvable:$true] %s3130_s12 }
  0x6b   : > { %824 = vmatpush.bf16.msrb.mxu0 %v3301_v9  ;;  %v4471_v9 = vld [vmem:[#allocation15 + $0x254] sm:$0xf0]  ;;  %v4465_v27 = vld [vmem:[#allocation15 + $0x22c] sm:$0xf]  ;;  %v3325_v31 = vor.u32 %v4433_v25, %v3322_v26  ;;  %v3178_v36 = vld [vmem:[#allocation15 + $0x18] sm:$0xf0] }
  0x6c   : > { %837 = vmatpush.bf16.msrb.mxu1 %v3429_v13  ;;  %863 = vmatpush.bf16.msrb.mxu3 %v3305_v17  ;;  %v4437_v13 = vld [vmem:[#allocation15 + $0x14c] sm:$0xf]  ;;  %v3465_v17 = vor.u32 %v4471_v9, %v3464_v8  ;;  %v3453_v35 = vor.u32 %v4465_v27, %v3450_v28  ;;  %v3306_v38 = vld [vmem:[#allocation15 + $0x118] sm:$0xf0]  ;;  %v3781_v62 = vld [vmem:[#allocation16 + $0x1d0] sm:$0xf0] }
  0x6d   : > { %850 = vmatpush.bf16.msrb.mxu2 %v3177_v14  ;;  %v3338_v14 = vld [vmem:[#allocation15 + $0x158] sm:$0xf0]  ;;  %v4397_v34 = vld [vmem:[#allocation15 + $0xc] sm:$0xf]  ;;  %v4520_v3 = vld [vmem:[#allocation16 + $0xe4] sm:$0xf] }
  0x6e   : > { %825 = vmatmul.bf16.vlgmr.msrb.gmra.mxu0 %v5148_v63  ;;  %v4461_v39 = vld [vmem:[#allocation15 + $0x20c] sm:$0xf]  ;;  %v3434_v40 = vld [vmem:[#allocation15 + $0x218] sm:$0xf0]  ;;  %v3795_v9 = vld [vmem:[#allocation16 + $0x1e0] sm:$0xf] }
  0x6f   : > { %869 = vmatpush.bf16.msra.mxu0 %v3545_v18  ;;  %838 = vmatmul.bf16.vlgmr.msrb.gmra.mxu1 %v5145_v56  ;;  %v3213_v18 = vor.u32 %v4405_v10, %v3210_v12  ;;  %v4554_v10 = vld [vmem:[#allocation16 + $0x1ec] sm:$0xf0]  ;;  %v3651_v15 = vld [vmem:[#allocation16 + $0xc0] sm:$0xf]  ;;  %v4540_v28 = vld [vmem:[#allocation16 + $0x184] sm:$0xf] }
  0x70   : > { %882 = vmatpush.bf16.msra.mxu1 %v3293_v19  ;;  %908 = vmatpush.bf16.msra.mxu3 %v3549_v24  ;;  %v3341_v19 = vor.u32 %v4437_v13, %v3338_v14  ;;  %v3194_v24 = vld [vmem:[#allocation15 + $0x38] sm:$0xf0]  ;;  %v3796_v12 = vor.u32 %v4554_v10, %v3795_v9  ;;  %v3765_v13 = vld [vmem:[#allocation16 + $0x1b0] sm:$0xf0]  ;;  %v4518_v16 = vld [vmem:[#allocation16 + $0xcc] sm:$0xf0] }
  0x71   : > { %895 = vmatpush.bf16.msra.mxu2 %v3421_v20  ;;  %864 = vmatmul.bf16.vlgmr.msrb.gmra.mxu3 %v5148_v63  ;;  %v3448_v20 = vld [vmem:[#allocation15 + $0x228] sm:$0xf]  ;;  %v3779_v25 = vld [vmem:[#allocation16 + $0x1c0] sm:$0xf]  ;;  %v4550_v26 = vld [vmem:[#allocation16 + $0x1cc] sm:$0xf0] }
  0x72   : > { %851 = vmatmul.bf16.vlgmr.msrb.gmra.mxu2 %v5150_v4  ;;  %v3449_v29 = vor.u32 %v4467_v21, %v3448_v20  ;;  %v3653_v20 = vld [vmem:[#allocation16 + $0xd0] sm:$0xf0]  ;;  %v3780_v27 = vor.u32 %v4550_v26, %v3779_v25  ;;  %s3132_s2 = sshll.u32 (%p167_p0), %s5329_s11, 4  ;;  %s3133_s2 = int_to_ptr.hbm [resolvable:$true] %s3132_s2 }
  0x73   : > { %870 = vmatpush.bf16.msra.mxu0 %v3529_v30  ;;  %v3197_v30 = vor.u32 %v4401_v22, %v3194_v24 }
  0x74   : > { %883 = vmatpush.bf16.msra.mxu1 %v3277_v32  ;;  %909 = vmatpush.bf16.msra.mxu3 %v3533_v37  ;;  %v3432_v32 = vld [vmem:[#allocation15 + $0x208] sm:$0xf]  ;;  %v4429_v37 = vld [vmem:[#allocation15 + $0x10c] sm:$0xf] }
  0x75   : > { %896 = vmatpush.bf16.msra.mxu2 %v3405_v33  ;;  %v4463_v33 = vld [vmem:[#allocation15 + $0x214] sm:$0xf0] }
  0x76   : > { %v3433_v41 = vor.u32 %v4463_v33, %v3432_v32  ;;  %v3635_v32 = vld [vmem:[#allocation16 + $0xa0] sm:$0xf]  ;;  %v4514_v33 = vld [vmem:[#allocation16 + $0xac] sm:$0xf0] }
  0x77   : > { %871 = vmatpush.bf16.msra.mxu0 %v3513_v42  ;;  %v3181_v42 = vor.u32 %v4397_v34, %v3178_v36  ;;  %v4512_v34 = vld [vmem:[#allocation16 + $0xa4] sm:$0xf]  ;;  %v3636_v36 = vor.u32 %v4514_v33, %v3635_v32  ;;  %v4498_v32 = vld [vmem:[#allocation16 + $0x2c] sm:$0xf0]  ;;  %v279_v33 = vperm.slane %v5167_v46, 2 }
  0x78   : > { %884 = vmatpush.bf16.msra.mxu1 %v3261_v43  ;;  %910 = vmatpush.bf16.msra.mxu3 %v3517_v48  ;;  %v3309_v43 = vor.u32 %v4429_v37, %v3306_v38  ;;  %v277_v48 = vperm.slane %v5167_v46, 0  ;;  %v3637_v37 = vld [vmem:[#allocation16 + $0xb0] sm:$0xf0] }
  0x79   : > { %897 = vmatpush.bf16.msra.mxu2 %v3389_v44  ;;  %v3437_v44 = vor.u32 %v4461_v39, %v3434_v40  ;;  %v3640_v39 = vor.u32 %v4512_v34, %v3637_v37  ;;  %v3763_v40 = vld [vmem:[#allocation16 + $0x1a0] sm:$0xf]  ;;  %v4496_v37 = vld [vmem:[#allocation16 + $0x24] sm:$0xf] }
  0x7b   : > { %872 = vmatpush.bf16.msra.mxu0 %v3497_v54 }
  0x7c   : > { %885 = vmatpush.bf16.msra.mxu1 %v3245_v55  ;;  %911 = vmatpush.bf16.msra.mxu3 %v3501_v61  ;;  %v4548_v61 = vld [vmem:[#allocation16 + $0x1c4] sm:$0xf] }
  0x7d   : > { %898 = vmatpush.bf16.msra.mxu2 %v3373_v57  ;;  %v4552_v57 = vld [vmem:[#allocation16 + $0x1e4] sm:$0xf]  ;;  %v3784_v0 = vor.u32 %v4548_v61, %v3781_v62  ;;  %v3603_v61 = vld [vmem:[#allocation16 + $0x60] sm:$0xf]  ;;  %v4506_v62 = vld [vmem:[#allocation16 + $0x6c] sm:$0xf0] }
  0x7f   : > { %873 = vmatpush.bf16.msra.mxu0 %v3481_v5  ;;  %v3668_v5 = vor.u32 %v4522_v2, %v3667_v1  ;;  %v3604_v1 = vor.u32 %v4506_v62, %v3603_v61  ;;  %v3605_v2 = vld [vmem:[#allocation16 + $0x70] sm:$0xf0] }
  0x80   : > { %886 = vmatpush.bf16.msra.mxu1 %v3229_v6  ;;  %912 = vmatpush.bf16.msra.mxu3 %v3485_v11  ;;  %v3669_v6 = vld [vmem:[#allocation16 + $0xf0] sm:$0xf0]  ;;  %v4544_v11 = vld [vmem:[#allocation16 + $0x1a4] sm:$0xf] }
  0x81   : > { %899 = vmatpush.bf16.msra.mxu2 %v3357_v7  ;;  %v3672_v8 = vor.u32 %v4520_v3, %v3669_v6  ;;  %v3768_v14 = vor.u32 %v4544_v11, %v3765_v13  ;;  %v3731_v6 = vld [vmem:[#allocation16 + $0x160] sm:$0xf]  ;;  %v3701_v11 = vld [vmem:[#allocation16 + $0x130] sm:$0xf0] }
  0x83   : > { %874 = vmatpush.bf16.msra.mxu0 %v3465_v17  ;;  %v4516_v17 = vld [vmem:[#allocation16 + $0xc4] sm:$0xf] }
  0x84   : > { %887 = vmatpush.bf16.msra.mxu1 %v3213_v18  ;;  %913 = vmatpush.bf16.msra.mxu3 %v3469_v23  ;;  %v3656_v24 = vor.u32 %v4516_v17, %v3653_v20  ;;  %v4500_v17 = vld [vmem:[#allocation16 + $0x44] sm:$0xf] }
  0x85   : > { %900 = vmatpush.bf16.msra.mxu2 %v3341_v19  ;;  %v3652_v19 = vor.u32 %v4518_v16, %v3651_v15  ;;  %v3587_v15 = vld [vmem:[#allocation16 + $0x40] sm:$0xf]  ;;  %v4502_v16 = vld [vmem:[#allocation16 + $0x4c] sm:$0xf0] }
  0x86   : > { %v3588_v20 = vor.u32 %v4502_v16, %v3587_v15  ;;  %v4545_v15 = vld [vmem:[#allocation16 + $0x1ac] sm:$0xf] }
  0x87   : > { %875 = vmatpush.bf16.msra.mxu0 %v3449_v29  ;;  %v3749_v29 = vld [vmem:[#allocation16 + $0x190] sm:$0xf0] }
  0x88   : > { %888 = vmatpush.bf16.msra.mxu1 %v3197_v30  ;;  %914 = vmatpush.bf16.msra.mxu3 %v3453_v35 }
  0x89   : > { %901 = vmatpush.bf16.msra.mxu2 %v3325_v31  ;;  %v3752_v31 = vor.u32 %v4540_v28, %v3749_v29  ;;  %v4553_v28 = vld [vmem:[#allocation16 + $0x1ec] sm:$0xf] }
  0x8b   : > { %876 = vmatpush.bf16.msra.mxu0 %v3433_v41  ;;  %v4546_v41 = vld [vmem:[#allocation16 + $0x1ac] sm:$0xf0] }
  0x8c   : > { %889 = vmatpush.bf16.msra.mxu1 %v3181_v42  ;;  %915 = vmatpush.bf16.msra.mxu3 %v3437_v44  ;;  %v3764_v42 = vor.u32 %v4546_v41, %v3763_v40  ;;  %v3733_v44 = vld [vmem:[#allocation16 + $0x170] sm:$0xf0]  ;;  %v3699_v41 = vld [vmem:[#allocation16 + $0x120] sm:$0xf] }
  0x8d   : > { %902 = vmatpush.bf16.msra.mxu2 %v3309_v43  ;;  %v4536_v43 = vld [vmem:[#allocation16 + $0x164] sm:$0xf] }
  0x8e   : > { %877 = vmatmul.bf16.vlgmr.msra.gmra.mxu0 %v5145_v56 }
  0x8f   : > { %890 = vmatmul.bf16.vlgmr.msra.gmra.mxu1 %v5150_v4  ;;  %916 = vmatmul.bf16.vlgmr.msra.gmra.mxu3 %v5145_v56  ;;  %v3797_v56 = vld [vmem:[#allocation16 + $0x1f0] sm:$0xf0] }
  0x90   : > { %903 = vmatmul.bf16.vlgmr.msra.gmra.mxu2 %v5148_v63  ;;  %v3800_v58 = vor.u32 %v4552_v57, %v3797_v56  ;;  %1382 = vmatpush.bf16.msrb.mxu0 %v3668_v5  ;;  %v4542_v57 = vld [vmem:[#allocation16 + $0x18c] sm:$0xf0]  ;;  %v4532_v56 = vld [vmem:[#allocation16 + $0x144] sm:$0xf] }
  0x91   : > { %1408 = vmatpush.bf16.msrb.mxu2 %v3672_v8  ;;  %1395 = vmatpush.bf16.msrb.mxu1 %v3796_v12  ;;  %v4528_v8 = vld [vmem:[#allocation16 + $0x124] sm:$0xf] }
  0x92   : > { %1421 = vmatpush.bf16.msrb.mxu3 %v3800_v58 }
  0x94   : > { %1383 = vmatpush.bf16.msrb.mxu0 %v3652_v19  ;;  %v3589_v19 = vld [vmem:[#allocation16 + $0x50] sm:$0xf0] }
  0x95   : > { %1409 = vmatpush.bf16.msrb.mxu2 %v3656_v24  ;;  %1396 = vmatpush.bf16.msrb.mxu1 %v3780_v27  ;;  %v4524_v24 = vld [vmem:[#allocation16 + $0x104] sm:$0xf]  ;;  %v3685_v27 = vld [vmem:[#allocation16 + $0x110] sm:$0xf0] }
  0x96   : > { %1422 = vmatpush.bf16.msrb.mxu3 %v3784_v0  ;;  %v4504_v0 = vld [vmem:[#allocation16 + $0x64] sm:$0xf]  ;;  %v3688_v29 = vor.u32 %v4524_v24, %v3685_v27  ;;  %v3661_v27 = vld [vmem:[#allocation16 + $0xd8] sm:$0xf0] }
  0x97   : > { %v3608_v5 = vor.u32 %v4504_v0, %v3605_v2  ;;  %v4523_v0 = vld [vmem:[#allocation16 + $0xf4] sm:$0xf0] }
  0x98   : > { %1384 = vmatpush.bf16.msrb.mxu0 %v3636_v36 }
  0x99   : > { %1410 = vmatpush.bf16.msrb.mxu2 %v3640_v39  ;;  %1397 = vmatpush.bf16.msrb.mxu1 %v3764_v42  ;;  %v4530_v42 = vld [vmem:[#allocation16 + $0x12c] sm:$0xf0] }
  0x9a   : > { %1423 = vmatpush.bf16.msrb.mxu3 %v3768_v14  ;;  %v3704_v14 = vor.u32 %v4528_v8, %v3701_v11 }
  0x9e   : > { %1424 = vmatpush.bf16.msrb.mxu3 %v3752_v31  ;;  %v3571_v31 = vld [vmem:[#allocation16 + $0x20] sm:$0xf] }
  0x9f   : > { %v3572_v36 = vor.u32 %v4498_v32, %v3571_v31  ;;  %v3787_v31 = vld [vmem:[#allocation16 + $0x1c8] sm:$0xf]  ;;  %v4541_v32 = vld [vmem:[#allocation16 + $0x18c] sm:$0xf] }
  0xcb   : > { %v774_v47 = vpop.f32.mrf.mxu0 }
  0xcc   : > { %v787_v45 = vpop.f32.mrf.mxu1  ;;  %v775_v51 = vadd.f32 %v774_v47, %v277_v48  ;;  %v3736_v47 = vor.u32 %v4536_v43, %v3733_v44  ;;  %v3619_v48 = vld [vmem:[#allocation16 + $0x80] sm:$0xf] }
  0xce   : > { %v788_v54 = vadd.f32 %v787_v45, %v775_v51  ;;  %1425 = vmatpush.bf16.msrb.mxu3 %v3736_v47  ;;  %v3700_v47 = vor.u32 %v4530_v42, %v3699_v41  ;;  %v3643_v41 = vld [vmem:[#allocation16 + $0xa8] sm:$0xf]  ;;  %v4515_v42 = vld [vmem:[#allocation16 + $0xb4] sm:$0xf0] }
  0xd3   : > { %v776_v53 = vpop.f32.mrf.mxu0 }
  0xd4   : > { %v813_v50 = vpop.f32.mrf.mxu3  ;;  %v789_v52 = vpop.f32.mrf.mxu1 }
  0xd5   : > { %v800_v49 = vpop.f32.mrf.mxu2  ;;  %v814_v7 = vadd.f32 %v813_v50, %v278_v60  ;;  %v4508_v50 = vld [vmem:[#allocation16 + $0x84] sm:$0xf] }
  0xd6   : > { %v801_v63 = vadd.f32 %v800_v49, %v788_v54  ;;  %v4510_v49 = vld [vmem:[#allocation16 + $0x8c] sm:$0xf0]  ;;  %v3621_v54 = vld [vmem:[#allocation16 + $0x90] sm:$0xf0] }
  0xd7   : > { %v3620_v53 = vor.u32 %v4510_v49, %v3619_v48  ;;  %v4549_v48 = vld [vmem:[#allocation16 + $0x1cc] sm:$0xf]  ;;  %v3789_v49 = vld [vmem:[#allocation16 + $0x1d8] sm:$0xf0] }
  0xd8   : > { %v3550_v59 = vmul.f32 -1.442695, %v801_v63  ;;  %v3747_v63 = vld [vmem:[#allocation16 + $0x180] sm:$0xf] }
  0xd9   : > { %1385 = vmatpush.bf16.msrb.mxu0 %v3620_v53  ;;  %v3748_v58 = vor.u32 %v4542_v57, %v3747_v63  ;;  %v3555_v53 = vld [vmem:[#allocation16] sm:$0xf]  ;;  %v280_v57 = vperm.slane %v5167_v46, 3 }
  0xda   : > { %4726 = vpow2.f32 %v3550_v59  ;;  %v3717_v59 = vld [vmem:[#allocation16 + $0x150] sm:$0xf0] }
  0xdb   : > { %v3720_v60 = vor.u32 %v4532_v56, %v3717_v59  ;;  %1398 = vmatpush.bf16.msrb.mxu1 %v3748_v58  ;;  %v3557_v58 = vld [vmem:[#allocation16 + $0x10] sm:$0xf0]  ;;  %v3675_v59 = vld [vmem:[#allocation16 + $0xe8] sm:$0xf] }
  0xdc   : > { %v815_v55 = vpop.f32.mrf.mxu3 }
  0xdd   : > { %v802_v4 = vpop.f32.mrf.mxu2  ;;  %v3624_v55 = vor.u32 %v4508_v50, %v3621_v54  ;;  %1426 = vmatpush.bf16.msrb.mxu3 %v3720_v60  ;;  %1386 = vmatpush.bf16.msrb.mxu0 %v3604_v1  ;;  %v4494_v54 = vld [vmem:[#allocation16 + $0xc] sm:$0xf0]  ;;  %v4521_v1 = vld [vmem:[#allocation16 + $0xec] sm:$0xf] }
  0xde   : > { %v3556_v56 = vor.u32 %v4494_v54, %v3555_v53  ;;  %v3771_v53 = vld [vmem:[#allocation16 + $0x1a8] sm:$0xf] }
  0xdf   : > { %1411 = vmatpush.bf16.msrb.mxu2 %v3624_v55  ;;  %v979_v54 = vld [vmem:[#allocation3] sm:$0xff] }
  0xe0   : > { %v4727_v21 = vpop.eup %4726 }
  0xe1   : > { %v5171_v35 = vadd.f32 1.0, %v4727_v21  ;;  %1427 = vmatpush.bf16.msrb.mxu3 %v3704_v14  ;;  %v3592_v21 = vor.u32 %v4500_v17, %v3589_v19  ;;  %1387 = vmatpush.bf16.msrb.mxu0 %v3588_v20  ;;  %v4555_v14 = vld [vmem:[#allocation16 + $0x1f4] sm:$0xf0]  ;;  %v3659_v19 = vld [vmem:[#allocation16 + $0xc8] sm:$0xf] }
  0xe2   : > { %v4519_v20 = vld [vmem:[#allocation16 + $0xd4] sm:$0xf0] }
  0xe3   : > { %1412 = vmatpush.bf16.msrb.mxu2 %v3608_v5  ;;  %v934_v39 = vand.u32 2147483647, %v5171_v35  ;;  %v936_v63 = vand.u32 2147483648, %v5171_v35  ;;  %vm930_vm0 = vweird.f32 %v5171_v35  ;;  %v3683_v5 = vld [vmem:[#allocation16 + $0x100] sm:$0xf] }
  0xe5   : > { %1428 = vmatpush.bf16.msrb.mxu3 %v3688_v29  ;;  %1388 = vmatpush.bf16.msrb.mxu0 %v3572_v36  ;;  %vm5199_vm2 = vcmp.eq.f32.partialorder %v934_v39, 8.507059e+37  ;;  %v3757_v39 = vld [vmem:[#allocation16 + $0x198] sm:$0xf0] }
  0xe7   : > { %1413 = vmatpush.bf16.msrb.mxu2 %v3592_v21 }
  0xe9   : > { %1389 = vmatpush.bf16.msrb.mxu0 %v3556_v56  ;;  %v4537_v56 = vld [vmem:[#allocation16 + $0x16c] sm:$0xf] }
  0xeb   : > { %v826_v18 = vpop.f32.mrf.mxu0 }
  0xec   : > { %v827_v22 = vadd.f32 %v826_v18, %v814_v7  ;;  %v839_v23 = vpop.f32.mrf.mxu1  ;;  %v4538_v7 = vld [vmem:[#allocation16 + $0x16c] sm:$0xf0] }
  0xed   : > { %v3732_v10 = vor.u32 %v4538_v7, %v3731_v6  ;;  %v4526_v6 = vld [vmem:[#allocation16 + $0x10c] sm:$0xf0] }
  0xee   : > { %v840_v30 = vadd.f32 %v839_v23, %v827_v22  ;;  %v3715_v22 = vld [vmem:[#allocation16 + $0x140] sm:$0xf]  ;;  %v4534_v23 = vld [vmem:[#allocation16 + $0x14c] sm:$0xf0]  ;;  %v3684_v11 = vor.u32 %v4526_v6, %v3683_v5 }
  0xef   : > { %1399 = vmatpush.bf16.msrb.mxu1 %v3732_v10  ;;  %v3716_v26 = vor.u32 %v4534_v23, %v3715_v22  ;;  %v4507_v22 = vld [vmem:[#allocation16 + $0x74] sm:$0xf0] }
  0xf0   : > { %v3551_v38 = vmul.f32 -1.442695, %v840_v30  ;;  %v3805_v30 = vld [vmem:[#allocation16 + $0x1f8] sm:$0xf0] }
  0xf1   : > { %v3808_v34 = vor.u32 %v4553_v28, %v3805_v30 }
  0xf2   : > { %4728 = vpow2.f32 %v3551_v38  ;;  %v3573_v38 = vld [vmem:[#allocation16 + $0x30] sm:$0xf0] }
  0xf3   : > { %v828_v52 = vpop.f32.mrf.mxu0  ;;  %4730 = vrcp.f32 %v5171_v35  ;;  %1400 = vmatpush.bf16.msrb.mxu1 %v3716_v26  ;;  %v3576_v40 = vor.u32 %v4496_v37, %v3573_v38  ;;  %1473 = vmatpush.bf16.msra.mxu3 %v3808_v34  ;;  %v4517_v26 = vld [vmem:[#allocation16 + $0xcc] sm:$0xf]  ;;  %v937_v37 = vor.u32 1.1754944e-38, %v936_v63  ;;  %v4547_v63 = vld [vmem:[#allocation16 + $0x1b4] sm:$0xf0] }
  0xf4   : > { %v5175_v51 = vpop.f32.mrf.mxu3  ;;  %v841_v4 = vpop.f32.mrf.mxu1  ;;  %v3792_v52 = vor.u32 %v4549_v48, %v3789_v49  ;;  %v3664_v30 = vor.u32 %v4517_v26, %v3661_v27  ;;  %v3644_v49 = vor.u32 %v4515_v42, %v3643_v41  ;;  %v3772_v46 = vor.u32 %v4547_v63, %v3771_v53  ;;  %v3613_v26 = vld [vmem:[#allocation16 + $0x78] sm:$0xf0]  ;;  %v3739_v27 = vld [vmem:[#allocation16 + $0x168] sm:$0xf]  ;;  %v4535_v42 = vld [vmem:[#allocation16 + $0x154] sm:$0xf0] }
  0xf5   : > { %v5173_v45 = vpop.f32.mrf.mxu2  ;;  %1414 = vmatpush.bf16.msrb.mxu2 %v3576_v40  ;;  %v4492_v4 = vld [vmem:[#allocation16 + $0x4] sm:$0xf]  ;;  %v3760_v40 = vor.u32 %v4541_v32, %v3757_v39  ;;  %v3723_v41 = vld [vmem:[#allocation16 + $0x148] sm:$0xf]  ;;  %v3581_v53 = vld [vmem:[#allocation16 + $0x38] sm:$0xf0] }
  0xf6   : > { %v853_v55 = vadd.f32 %v5173_v45, %v279_v33  ;;  %v3560_v62 = vor.u32 %v4492_v4, %v3557_v58  ;;  %v3676_v45 = vor.u32 %v4523_v0, %v3675_v59  ;;  %v3627_v59 = vld [vmem:[#allocation16 + $0x88] sm:$0xf]  ;;  %v4531_v63 = vld [vmem:[#allocation16 + $0x134] sm:$0xf0] }
  0xf7   : > { %1401 = vmatpush.bf16.msrb.mxu1 %v3700_v47  ;;  %1474 = vmatpush.bf16.msra.mxu3 %v3792_v52  ;;  %v985_v52 = vld [vmem:[#allocation4] sm:$0xff]  ;;  %v3693_v47 = vld [vmem:[#allocation16 + $0x118] sm:$0xf0] }
  0xf8   : > { %v4729_v3 = vpop.eup %4728  ;;  %v866_v16 = vadd.f32 %v5175_v51, %v853_v55  ;;  %1434 = vmatpush.bf16.msra.mxu0 %v3676_v45  ;;  %v5234_v55 = vpack.c.bf16 %v985_v52, %v985_v52  ;;  %v3755_v45 = vld [vmem:[#allocation16 + $0x188] sm:$0xf]  ;;  %v4497_v52 = vld [vmem:[#allocation16 + $0x2c] sm:$0xf] }
  0xf9   : > { %v5178_v9 = vadd.f32 1.0, %v4729_v3  ;;  %v5180_v12 = vpop.eup %4730  ;;  %v3677_v3 = vld [vmem:[#allocation16 + $0xf8] sm:$0xf0]  ;;  %1415 = vmatpush.bf16.msrb.mxu2 %v3560_v62 }
  0xfa   : > { %v926_v25 = vmul.f32 %v5180_v12, %v5171_v35  ;;  %vm931_vm1 = vweird.f32 %v5180_v12  ;;  %v3680_v10 = vor.u32 %v4521_v1, %v3677_v3  ;;  %v4551_v35 = vld [vmem:[#allocation16 + $0x1d4] sm:$0xf0]  ;;  %1429 = vmatmul.bf16.vlgmr.msrb.gmra.mxu3 %v5234_v55 }
  0xfb   : > { %4732 = vrcp.f32 %v5178_v9  ;;  %v955_v61 = vand.u32 2147483648, %v5178_v9  ;;  %vm949_vm3 = vweird.f32 %v5178_v9  ;;  %vm5210_vm5 = vmor %vm930_vm0, %vm931_vm1  ;;  %v953_v24 = vand.u32 2147483647, %v5178_v9  ;;  %1402 = vmatpush.bf16.msrb.mxu1 %v3684_v11  ;;  %v4543_v3 = vld [vmem:[#allocation16 + $0x194] sm:$0xf0] }
  0xfc   : > { %v867_v18 = vpop.f32.mrf.mxu3  ;;  %v927_v44 = vsub.f32 1.0, %v926_v25  ;;  %v3660_v25 = vor.u32 %v4519_v20, %v3659_v19  ;;  %v3788_v38 = vor.u32 %v4551_v35, %v3787_v31  ;;  %v3725_v11 = vld [vmem:[#allocation16 + $0x158] sm:$0xf0]  ;;  %v3595_v35 = vld [vmem:[#allocation16 + $0x48] sm:$0xf] }
  0xfd   : > { %v854_v13 = vpop.f32.mrf.mxu2  ;;  %v3773_v18 = vld [vmem:[#allocation16 + $0x1b8] sm:$0xf0]  ;;  %1460 = vmatpush.bf16.msra.mxu2 %v3680_v10  ;;  %v956_v34 = vor.u32 1.1754944e-38, %v955_v61  ;;  %vm5228_vm7 = vcmp.eq.f32.partialorder %v953_v24, 8.507059e+37  ;;  %v4509_v61 = vld [vmem:[#allocation16 + $0x8c] sm:$0xf] }
  0xfe   : > { %v928_v2 = vmul.f32 %v5180_v12, %v927_v44  ;;  %v3803_v13 = vld [vmem:[#allocation16 + $0x1e8] sm:$0xf]  ;;  %v3776_v51 = vor.u32 %v4545_v15, %v3773_v18  ;;  %1435 = vmatpush.bf16.msra.mxu0 %v3660_v25  ;;  %v4513_v44 = vld [vmem:[#allocation16 + $0xac] sm:$0xf]  ;;  %1403 = vmatmul.bf16.vlgmr.msrb.gmra.mxu1 %v5234_v55  ;;  %v3709_v31 = vld [vmem:[#allocation16 + $0x138] sm:$0xf0] }
  0xff   : > { %v3804_v17 = vor.u32 %v4555_v14, %v3803_v13  ;;  %v4533_v10 = vld [vmem:[#allocation16 + $0x14c] sm:$0xf] }
 0x100   : > { %v929_v36 = vadd.f32 %v5180_v12, %v928_v2  ;;  %1475 = vmatpush.bf16.msra.mxu3 %v3776_v51  ;;  %v3629_v2 = vld [vmem:[#allocation16 + $0x98] sm:$0xf0]  ;;  %v3728_v20 = vor.u32 %v4533_v10, %v3725_v11 }
 0x101   : > { %v5187_v43 = vpop.eup %4732  ;;  %1447 = vmatpush.bf16.msra.mxu1 %v3804_v17  ;;  %1461 = vmatpush.bf16.msra.mxu2 %v3664_v30 }
 0x102   : > { %v945_v50 = vmul.f32 %v5187_v43, %v5178_v9  ;;  %vm950_vm4 = vweird.f32 %v5187_v43  ;;  %v933_v58 = vsel %vm5210_vm5, %v5180_v12, %v929_v36  ;;  %1436 = vmatpush.bf16.msra.mxu0 %v3644_v49  ;;  %v4501_v36 = vld [vmem:[#allocation16 + $0x4c] sm:$0xf]  ;;  %v4499_v49 = vld [vmem:[#allocation16 + $0x34] sm:$0xf0] }
 0x103   : > { %vm5220_vm6 = vmor %vm949_vm3, %vm950_vm4  ;;  %v938_v14 = vsel %vm5199_vm2, %v937_v37, %v933_v58  ;;  %v3597_v37 = vld [vmem:[#allocation16 + $0x58] sm:$0xf0]  ;;  %v4495_v58 = vld [vmem:[#allocation16 + $0x14] sm:$0xf0] }
 0x104   : > { %v946_v60 = vsub.f32 1.0, %v945_v50  ;;  %v3645_v50 = vld [vmem:[#allocation16 + $0xb8] sm:$0xf0]  ;;  %1476 = vmatpush.bf16.msra.mxu3 %v3760_v40  ;;  %v3600_v40 = vor.u32 %v4501_v36, %v3597_v37  ;;  %v4558_v37 = vld [vmem:[#allocation10 + $0x10] sm:$0xff] }
 0x105   : > { %1448 = vmatpush.bf16.msra.mxu1 %v3788_v38  ;;  %v3648_v4 = vor.u32 %v4513_v44, %v3645_v50  ;;  %v4525_v44 = vld [vmem:[#allocation16 + $0x10c] sm:$0xf] }
 0x106   : > { %v947_v7 = vmul.f32 %v5187_v43, %v946_v60  ;;  %v4511_v60 = vld [vmem:[#allocation16 + $0x94] sm:$0xf0]  ;;  %v3696_v50 = vor.u32 %v4525_v44, %v3693_v47  ;;  %v4557_v44 = vld [vmem:[#allocation10 + $0x8] sm:$0xff] }
 0x107   : > { %v3628_v1 = vor.u32 %v4511_v60, %v3627_v59  ;;  %1462 = vmatpush.bf16.msra.mxu2 %v3648_v4  ;;  %v4493_v59 = vld [vmem:[#allocation16 + $0xc] sm:$0xf]  ;;  %v3565_v60 = vld [vmem:[#allocation16 + $0x18] sm:$0xf0]  ;;  %v4565_v47 = vld [vmem:[#allocation10 + $0x48] sm:$0xff] }
 0x108   : > { %v948_v23 = vadd.f32 %v5187_v43, %v947_v7  ;;  %v3632_v7 = vor.u32 %v4509_v61, %v3629_v2  ;;  %v3568_v2 = vor.u32 %v4493_v59, %v3565_v60  ;;  %v4594_v60 = vld [vmem:[#allocation10 + $0x130] sm:$0xff] }
 0x109   : > { %1449 = vmatpush.bf16.msra.mxu1 %v3772_v46  ;;  %1437 = vmatpush.bf16.msra.mxu0 %v3628_v1 }
 0x10a   : > { %v952_v9 = vsel %vm5220_vm6, %v5187_v43, %v948_v23  ;;  %v3741_v43 = vld [vmem:[#allocation16 + $0x178] sm:$0xf0]  ;;  %v4505_v23 = vld [vmem:[#allocation16 + $0x6c] sm:$0xf] }
 0x10b   : > { %v878_v21 = vpop.f32.mrf.mxu0  ;;  %v957_v62 = vsel %vm5228_vm7, %v956_v34, %v952_v9  ;;  %1463 = vmatpush.bf16.msra.mxu2 %v3632_v7  ;;  %v3616_v8 = vor.u32 %v4505_v23, %v3613_v26  ;;  %v4503_v34 = vld [vmem:[#allocation16 + $0x54] sm:$0xf0]  ;;  %v3724_v9 = vor.u32 %v4535_v42, %v3723_v41  ;;  %v4578_v26 = vld [vmem:[#allocation10 + $0xb0] sm:$0xff] }
 0x10c   : > { %v879_v28 = vadd.f32 %v878_v21, %v866_v16  ;;  %v891_v29 = vpop.f32.mrf.mxu1  ;;  %v3756_v16 = vor.u32 %v4543_v3, %v3755_v45  ;;  %v980_v17 = vmul.f32 %v979_v54, %v957_v62  ;;  %v3611_v21 = vld [vmem:[#allocation16 + $0x68] sm:$0xf]  ;;  %v3596_v39 = vor.u32 %v4503_v34, %v3595_v35  ;;  %v4571_v3 = vld [vmem:[#allocation10 + $0x78] sm:$0xff]  ;;  %v4560_v35 = vld [vmem:[#allocation10 + $0x20] sm:$0xff] }
 0x10d   : > { %v892_v48 = vadd.f32 %v891_v29, %v280_v57  ;;  %v3744_v57 = vor.u32 %v4537_v56, %v3741_v43  ;;  %v3612_v25 = vor.u32 %v4507_v22, %v3611_v21  ;;  %v4529_v29 = vld [vmem:[#allocation16 + $0x12c] sm:$0xf]  ;;  %v3707_v54 = vld [vmem:[#allocation16 + $0x128] sm:$0xf]  ;;  %v3584_v56 = vor.u32 %v4497_v52, %v3581_v53  ;;  %v4563_v21 = vld [vmem:[#allocation10 + $0x38] sm:$0xff] }
 0x10e   : > { %4734 = vtanh.f32 %v879_v28  ;;  %1450 = vmatpush.bf16.msra.mxu1 %v3756_v16  ;;  %v4539_v28 = vld [vmem:[#allocation16 + $0x174] sm:$0xf0]  ;;  %v3712_v33 = vor.u32 %v4529_v29, %v3709_v31  ;;  %v3563_v43 = vld [vmem:[#allocation16 + $0x8] sm:$0xf]  ;;  %v4579_v22 = vld [vmem:[#allocation10 + $0xb8] sm:$0xff] }
 0x10f   : > { %1477 = vmatpush.bf16.msra.mxu3 %v3744_v57  ;;  %v3740_v30 = vor.u32 %v4539_v28, %v3739_v27  ;;  %1438 = vmatpush.bf16.msra.mxu0 %v3612_v25  ;;  %v3708_v57 = vor.u32 %v4531_v63, %v3707_v54  ;;  %v3691_v62 = vld [vmem:[#allocation16 + $0x108] sm:$0xf]  ;;  %v3564_v1 = vor.u32 %v4495_v58, %v3563_v43  ;;  %v4584_v27 = vld [vmem:[#allocation10 + $0xe0] sm:$0xff]  ;;  %v4561_v28 = vld [vmem:[#allocation10 + $0x28] sm:$0xff] }
 0x110   : > { %1464 = vmatpush.bf16.msra.mxu2 %v3616_v8  ;;  %v4562_v25 = vld [vmem:[#allocation10 + $0x30] sm:$0xff]  ;;  %v4568_v8 = vld [vmem:[#allocation10 + $0x60] sm:$0xff]  ;;  %v4577_v29 = vld [vmem:[#allocation10 + $0xa8] sm:$0xff] }
 0x111   : > { %v4583_v31 = vld [vmem:[#allocation10 + $0xd8] sm:$0xff]  ;;  %v4582_v41 = vld [vmem:[#allocation10 + $0xd0] sm:$0xff]  ;;  %v4564_v54 = vld [vmem:[#allocation10 + $0x40] sm:$0xff] }
 0x112   : > { %v917_v6 = vpop.f32.mrf.mxu3  ;;  %1451 = vmatpush.bf16.msra.mxu1 %v3740_v30  ;;  %v4567_v30 = vld [vmem:[#allocation10 + $0x58] sm:$0xff]  ;;  %v4580_v58 = vld [vmem:[#allocation10 + $0xc0] sm:$0xff] }
 0x113   : > { %v904_v0 = vpop.f32.mrf.mxu2  ;;  %v880_v12 = vpop.f32.mrf.mxu0  ;;  %1478 = vmatpush.bf16.msra.mxu3 %v3728_v20  ;;  %1439 = vmatpush.bf16.msra.mxu0 %v3596_v39  ;;  %v4575_v34 = vld [vmem:[#allocation10 + $0x98] sm:$0xff]  ;;  %v4566_v39 = vld [vmem:[#allocation10 + $0x50] sm:$0xff] }
 0x114   : > { %v905_v5 = vadd.f32 %v904_v0, %v892_v48  ;;  %v4735_v13 = vpop.eup %4734  ;;  %v893_v15 = vpop.f32.mrf.mxu1  ;;  %v3579_v48 = vld [vmem:[#allocation16 + $0x28] sm:$0xf]  ;;  %1465 = vmatpush.bf16.msra.mxu2 %v3600_v40  ;;  %v4527_v0 = vld [vmem:[#allocation16 + $0x114] sm:$0xf0]  ;;  %v4595_v52 = vld [vmem:[#allocation10 + $0x138] sm:$0xff] }
 0x115   : > { %v981_v18 = vmul.f32 %v4735_v13, %v938_v14  ;;  %v3580_v4 = vor.u32 %v4499_v49, %v3579_v48  ;;  %v3692_v45 = vor.u32 %v4527_v0, %v3691_v62  ;;  %v4570_v14 = vld [vmem:[#allocation10 + $0x70] sm:$0xff]  ;;  %v4573_v48 = vld [vmem:[#allocation10 + $0x88] sm:$0xff]  ;;  %v4611_v43 = vld [vmem:[#allocation10 + $0x1b8] sm:$0xff] }
 0x116   : > { %v918_v19 = vadd.f32 %v917_v6, %v905_v5  ;;  %1452 = vmatpush.bf16.msra.mxu1 %v3724_v9  ;;  %v4587_v6 = vld [vmem:[#allocation10 + $0xf8] sm:$0xff]  ;;  %v4586_v15 = vld [vmem:[#allocation10 + $0xf0] sm:$0xff]  ;;  %v4581_v49 = vld [vmem:[#allocation10 + $0xc8] sm:$0xff] }
 0x117   : > { %v5245_v24 = vadd.f32 %v981_v18, %v980_v17  ;;  %1479 = vmatpush.bf16.msra.mxu3 %v3712_v33  ;;  %1440 = vmatpush.bf16.msra.mxu0 %v3580_v4  ;;  %v4559_v33 = vld [vmem:[#allocation10 + $0x18] sm:$0xff]  ;;  %v4574_v40 = vld [vmem:[#allocation10 + $0x90] sm:$0xff]  ;;  %v4572_v4 = vld [vmem:[#allocation10 + $0x80] sm:$0xff] }
 0x118   : > { %v3552_v51 = vmul.f32 -1.442695, %v918_v19  ;;  %1466 = vmatpush.bf16.msra.mxu2 %v3584_v56  ;;  %v4603_v56 = vld [vmem:[#allocation10 + $0x178] sm:$0xff]  ;;  %v4602_v62 = vld [vmem:[#allocation10 + $0x170] sm:$0xff] }
 0x119   : > { %3109 = vst [vmem:[#allocation3] sm:$0xff] %v5245_v24  ;;  %v4610_v0 = vld [vmem:[#allocation10 + $0x1b0] sm:$0xff] }
 0x11a   : > { %4736 = vpow2.f32 %v3552_v51  ;;  %v919_v38 = vpop.f32.mrf.mxu3  ;;  %1453 = vmatpush.bf16.msra.mxu1 %v3708_v57  ;;  %v4585_v51 = vld [vmem:[#allocation10 + $0xe8] sm:$0xff] }
 0x11b   : > { %v906_v32 = vpop.f32.mrf.mxu2  ;;  %1480 = vmatpush.bf16.msra.mxu3 %v3696_v50  ;;  %1441 = vmatpush.bf16.msra.mxu0 %v3564_v1  ;;  %v4556_v50 = vld [vmem:[#allocation10] sm:$0xff]  ;;  %v1052_v57 = vld [vmem:[#allocation18] sm:$0xf] }
 0x11c   : > { %1467 = vmatpush.bf16.msra.mxu2 %v3568_v2  ;;  %v4576_v32 = vld [vmem:[#allocation10 + $0xa0] sm:$0xff]  ;;  %v1054_v1 = vperm.slane %v1052_v57, 0  ;;  %v4618_v2 = vld [vmem:[#allocation10 + $0x1f0] sm:$0xff] }
 0x11e   : > { %1481 = vmatmul.bf16.vlgmr.msra.gmra.mxu3 %v5234_v55  ;;  %1454 = vmatpush.bf16.msra.mxu1 %v3692_v45 }
 0x11f   : > { %1950 = vmatpush.bf16.xpose.msrb.mxu3 %v4587_v6 }
 0x120   : > { %v4737_v46 = vpop.eup %4736 }
 0x121   : > { %v963_v61 = vadd.f32 1.0, %v4737_v46  ;;  %1455 = vmatmul.bf16.vlgmr.msra.gmra.mxu1 %v5234_v55  ;;  %v4619_v46 = vld [vmem:[#allocation10 + $0x1f8] sm:$0xff] }
 0x122   : > { %1822 = vmatpush.bf16.xpose.msrb.mxu1 %v4571_v3 }
 0x123   : > { %4738 = vrcp.f32 %v963_v61  ;;  %v975_v10 = vand.u32 2147483648, %v963_v61  ;;  %v973_v13 = vand.u32 2147483647, %v963_v61  ;;  %vm969_vm9 = vweird.f32 %v963_v61 }
 0x124   : > { %4740 = vtanh.f32 %v5245_v24  ;;  %v4569_v24 = vld [vmem:[#allocation10 + $0x68] sm:$0xff] }
 0x125   : > { %v976_v17 = vor.u32 1.1754944e-38, %v975_v10  ;;  %vm974_vm11 = vcmp.eq.f32.partialorder %v973_v13, 8.507059e+37  ;;  %v4609_v10 = vld [vmem:[#allocation10 + $0x1a8] sm:$0xff] }
 0x127   : > { %1951 = vmatpush.bf16.xpose.msrb.mxu3 %v4586_v15 }
 0x129   : > { %v4739_v5 = vpop.eup %4738 }
 0x12a   : > { %v965_v12 = vmul.f32 %v4739_v5, %v963_v61  ;;  %vm970_vm8 = vweird.f32 %v4739_v5  ;;  %1823 = vmatpush.bf16.xpose.msrb.mxu1 %v4570_v14  ;;  %v4741_v19 = vpop.eup %4740  ;;  %v4617_v14 = vld [vmem:[#allocation10 + $0x1e8] sm:$0xff] }
 0x12b   : > { %vm971_vm10 = vmor %vm969_vm9, %vm970_vm8  ;;  %vm1554_vm8 = vcmask 1040384   ;;  %vm1559_vm9 = vcmask 1041409  }
 0x12c   : > { %v966_v7 = vsub.f32 1.0, %v965_v12  ;;  %v1055_v12 = vperm.slane %v1052_v57, 1 }
 0x12e   : > { %v967_v11 = vmul.f32 %v4739_v5, %v966_v7  ;;  %v4601_v7 = vld [vmem:[#allocation10 + $0x168] sm:$0xff] }
 0x12f   : > { %1952 = vmatpush.bf16.xpose.msrb.mxu3 %v4585_v51 }
 0x130   : > { %v968_v16 = vadd.f32 %v4739_v5, %v967_v11 }
 0x132   : > { %v972_v18 = vsel %vm971_vm10, %v4739_v5, %v968_v16  ;;  %1824 = vmatpush.bf16.xpose.msrb.mxu1 %v4569_v24  ;;  %v4593_v5 = vld [vmem:[#allocation10 + $0x128] sm:$0xff]  ;;  %v4616_v24 = vld [vmem:[#allocation10 + $0x1e0] sm:$0xff]  ;;  %vm1563_vm10 = vcmask 1042434  }
 0x133   : > { %v977_v20 = vsel %vm974_vm11, %v976_v17, %v972_v18  ;;  %v4592_v18 = vld [vmem:[#allocation10 + $0x120] sm:$0xff]  ;;  %vm1567_vm11 = vcmask 1043459  }
 0x134   : > { %v984_v55 = vmul.f32 %v4741_v19, %v977_v20  ;;  %v4600_v20 = vld [vmem:[#allocation10 + $0x160] sm:$0xff] }
 0x136   : > { %v986_v23 = vpack.c.bf16 %v984_v55, %v984_v55  ;;  %3108 = vst [vmem:[#allocation2] sm:$0xff] %v984_v55  ;;  %v4608_v55 = vld [vmem:[#allocation10 + $0x1a0] sm:$0xff] }
 0x137   : > { %1953 = vmatpush.bf16.xpose.msrb.mxu3 %v4584_v27 }
 0x138   : > { %1390 = vmatmul.bf16.vlgmr.msrb.gmra.mxu0 %v986_v23  ;;  %1416 = vmatmul.bf16.vlgmr.msrb.gmra.mxu2 %v986_v23 }
 0x139   : > { %1758 = vmatpush.bf16.xpose.msrb.mxu0 %v4563_v21  ;;  %1886 = vmatpush.bf16.xpose.msrb.mxu2 %v4579_v22 }
 0x13a   : > { %1825 = vmatpush.bf16.xpose.msrb.mxu1 %v4568_v8  ;;  %v1057_v8 = vperm.slane %v1052_v57, 3 }
 0x13f   : > { %1954 = vmatpush.bf16.xpose.msrb.mxu3 %v4583_v31 }
 0x141   : > { %1759 = vmatpush.bf16.xpose.msrb.mxu0 %v4562_v25  ;;  %1887 = vmatpush.bf16.xpose.msrb.mxu2 %v4578_v26  ;;  %v4591_v25 = vld [vmem:[#allocation10 + $0x118] sm:$0xff] }
 0x142   : > { %1826 = vmatpush.bf16.xpose.msrb.mxu1 %v4567_v30  ;;  %v4607_v30 = vld [vmem:[#allocation10 + $0x198] sm:$0xff] }
 0x147   : > { %1955 = vmatpush.bf16.xpose.msrb.mxu3 %v4582_v41  ;;  %v4598_v41 = vld [vmem:[#allocation10 + $0x150] sm:$0xff] }
 0x148   : > { %1442 = vmatmul.bf16.vlgmr.msra.gmra.mxu0 %v986_v23  ;;  %1468 = vmatmul.bf16.vlgmr.msra.gmra.mxu2 %v986_v23 }
 0x149   : > { %1760 = vmatpush.bf16.xpose.msrb.mxu0 %v4561_v28  ;;  %1888 = vmatpush.bf16.xpose.msrb.mxu2 %v4577_v29  ;;  %v1056_v28 = vperm.slane %v1052_v57, 2  ;;  %v4599_v29 = vld [vmem:[#allocation10 + $0x158] sm:$0xff] }
 0x14a   : > { %1827 = vmatpush.bf16.xpose.msrb.mxu1 %v4566_v39 }
 0x14f   : > { %1956 = vmatpush.bf16.xpose.msrb.mxu3 %v4581_v49  ;;  %v4614_v49 = vld [vmem:[#allocation10 + $0x1d0] sm:$0xff] }
 0x151   : > { %1761 = vmatpush.bf16.xpose.msrb.mxu0 %v4560_v35  ;;  %1889 = vmatpush.bf16.xpose.msrb.mxu2 %v4576_v32  ;;  %v4615_v32 = vld [vmem:[#allocation10 + $0x1d8] sm:$0xff] }
 0x152   : > { %1828 = vmatpush.bf16.xpose.msrb.mxu1 %v4565_v47 }
 0x157   : > { %1957 = vmatpush.bf16.xpose.msrb.mxu3 %v4580_v58 }
 0x159   : > { %1762 = vmatpush.bf16.xpose.msrb.mxu0 %v4559_v33  ;;  %1890 = vmatpush.bf16.xpose.msrb.mxu2 %v4575_v34 }
 0x15a   : > { %1829 = vmatpush.bf16.xpose.msrb.mxu1 %v4564_v54 }
 0x15f   : > { %2206 = vmatpush.bf16.xpose.msra.mxu3 %v4619_v46 }
 0x161   : > { %1763 = vmatpush.bf16.xpose.msrb.mxu0 %v4558_v37  ;;  %1891 = vmatpush.bf16.xpose.msrb.mxu2 %v4574_v40  ;;  %v4590_v40 = vld [vmem:[#allocation10 + $0x110] sm:$0xff] }
 0x162   : > { %2078 = vmatpush.bf16.xpose.msra.mxu1 %v4603_v56 }
 0x167   : > { %2207 = vmatpush.bf16.xpose.msra.mxu3 %v4618_v2 }
 0x169   : > { %1764 = vmatpush.bf16.xpose.msrb.mxu0 %v4557_v44  ;;  %1892 = vmatpush.bf16.xpose.msrb.mxu2 %v4573_v48 }
 0x16a   : > { %2079 = vmatpush.bf16.xpose.msra.mxu1 %v4602_v62  ;;  %v1544_v62 = vld [vmem:[#allocation5] sm:$0xff] }
 0x16f   : > { %2208 = vmatpush.bf16.xpose.msra.mxu3 %v4617_v14 }
 0x171   : > { %1765 = vmatpush.bf16.xpose.msrb.mxu0 %v4556_v50  ;;  %1893 = vmatpush.bf16.xpose.msrb.mxu2 %v4572_v4 }
 0x172   : > { %2080 = vmatpush.bf16.xpose.msra.mxu1 %v4601_v7  ;;  %v4613_v7 = vld [vmem:[#allocation10 + $0x1c8] sm:$0xff] }
 0x177   : > { %2209 = vmatpush.bf16.xpose.msra.mxu3 %v4616_v24 }
 0x179   : > { %2014 = vmatpush.bf16.xpose.msra.mxu0 %v4595_v52  ;;  %2142 = vmatpush.bf16.xpose.msra.mxu2 %v4611_v43 }
 0x17a   : > { %2081 = vmatpush.bf16.xpose.msra.mxu1 %v4600_v20 }
 0x17b   : > { %v1404_v38 = vpop.f32.mrf.mxu1 }
 0x17d   : > { %v5251_v36 = vpop.f32.mrf.mxu3 }
 0x17f   : > { %2210 = vmatpush.bf16.xpose.msra.mxu3 %v4615_v32 }
 0x181   : > { %2015 = vmatpush.bf16.xpose.msra.mxu0 %v4594_v60  ;;  %2143 = vmatpush.bf16.xpose.msra.mxu2 %v4610_v0 }
 0x182   : > { %2082 = vmatpush.bf16.xpose.msra.mxu1 %v4599_v29 }
 0x183   : > { %v1406_v9 = vpop.f32.mrf.mxu1 }
 0x185   : > { %v1432_v42 = vpop.f32.mrf.mxu3 }
 0x186   : > { %v4606_v42 = vld [vmem:[#allocation10 + $0x190] sm:$0xff] }
 0x187   : > { %2211 = vmatpush.bf16.xpose.msra.mxu3 %v4614_v49 }
 0x189   : > { %2016 = vmatpush.bf16.xpose.msra.mxu0 %v4593_v5  ;;  %2144 = vmatpush.bf16.xpose.msra.mxu2 %v4609_v10 }
 0x18a   : > { %2083 = vmatpush.bf16.xpose.msra.mxu1 %v4598_v41 }
 0x18f   : > { %2212 = vmatpush.bf16.xpose.msra.mxu3 %v4613_v7 }
 0x191   : > { %2017 = vmatpush.bf16.xpose.msra.mxu0 %v4592_v18  ;;  %2145 = vmatpush.bf16.xpose.msra.mxu2 %v4608_v55  ;;  %v4612_v18 = vld [vmem:[#allocation10 + $0x1c0] sm:$0xff] }
 0x197   : > { %2213 = vmatpush.bf16.xpose.msra.mxu3 %v4612_v18 }
 0x199   : > { %2018 = vmatpush.bf16.xpose.msra.mxu0 %v4591_v25  ;;  %2146 = vmatpush.bf16.xpose.msra.mxu2 %v4607_v30 }
 0x19e   : > { %v5255_v63 = vpop.f32.mrf.mxu1 }
 0x1a1   : > { %v5253_v53 = vpop.f32.mrf.mxu3  ;;  %2019 = vmatpush.bf16.xpose.msra.mxu0 %v4590_v40  ;;  %2147 = vmatpush.bf16.xpose.msra.mxu2 %v4606_v42 }
 0x1a6   : > { %v1458_v61 = vpop.f32.mrf.mxu1 }
 0x1a9   : > { %v1484_v59 = vpop.f32.mrf.mxu3 }
 0x1aa   : > { %v4589_v59 = vld [vmem:[#allocation10 + $0x108] sm:$0xff] }
 0x1ab   : > { %2020 = vmatpush.bf16.xpose.msra.mxu0 %v4589_v59 }
 0x1b5   : > { %v1391_v45 = vpop.f32.mrf.mxu0 }
 0x1b6   : > { %v1392_v3 = vadd.f32 %v1391_v45, %v1054_v1  ;;  %v4597_v45 = vld [vmem:[#allocation10 + $0x148] sm:$0xff] }
 0x1b7   : > { %2084 = vmatpush.bf16.xpose.msra.mxu1 %v4597_v45 }
 0x1b8   : > { %v1405_v6 = vadd.f32 %v1404_v38, %v1392_v3  ;;  %v4605_v3 = vld [vmem:[#allocation10 + $0x188] sm:$0xff] }
 0x1b9   : > { %2148 = vmatpush.bf16.xpose.msra.mxu2 %v4605_v3 }
 0x1ba   : > { %v3809_v11 = vmul.f32 -1.442695, %v1405_v6 }
 0x1bb   : > { %v1417_v13 = vpop.f32.mrf.mxu2 }
 0x1bc   : > { %4742 = vpow2.f32 %v3809_v11  ;;  %v1418_v15 = vadd.f32 %v1417_v13, %v1055_v12  ;;  %v4588_v13 = vld [vmem:[#allocation10 + $0x100] sm:$0xff] }
 0x1bd   : > { %v1393_v16 = vpop.f32.mrf.mxu0  ;;  %2021 = vmatpush.bf16.xpose.msra.mxu0 %v4588_v13 }
 0x1be   : > { %v1431_v17 = vadd.f32 %v5251_v36, %v1418_v15  ;;  %v4596_v15 = vld [vmem:[#allocation10 + $0x140] sm:$0xff] }
 0x1bf   : > { %v4604_v16 = vld [vmem:[#allocation10 + $0x180] sm:$0xff]  ;;  %2085 = vmatpush.bf16.xpose.msra.mxu1 %v4596_v15 }
 0x1c0   : > { %v3810_v19 = vmul.f32 -1.442695, %v1431_v17 }
 0x1c1   : > { %2149 = vmatpush.bf16.xpose.msra.mxu2 %v4604_v16  ;;  %v5275_v16 = vld [vmem:[#allocation13] sm:$0xff] }
 0x1c2   : > { %v4743_v21 = vpop.eup %4742  ;;  %4744 = vpow2.f32 %v3810_v19 }
 0x1c3   : > { %v1489_v22 = vadd.f32 1.0, %v4743_v21  ;;  %v1419_v23 = vpop.f32.mrf.mxu2 }
 0x1c5   : > { %4746 = vrcp.f32 %v1489_v22  ;;  %v1443_v51 = vpop.f32.mrf.mxu0  ;;  %v1501_v54 = vand.u32 2147483648, %v1489_v22  ;;  %vm1495_vm13 = vweird.f32 %v1489_v22 }
 0x1c6   : > { %v1444_v36 = vadd.f32 %v1443_v51, %v1056_v28 }
 0x1c7   : > { %v1502_v57 = vor.u32 1.1754944e-38, %v1501_v54 }
 0x1c8   : > { %v4745_v26 = vpop.eup %4744  ;;  %v1457_v48 = vadd.f32 %v5255_v63, %v1444_v36 }
 0x1c9   : > { %v1508_v27 = vadd.f32 1.0, %v4745_v26 }
 0x1cb   : > { %v4747_v31 = vpop.eup %4746  ;;  %4748 = vrcp.f32 %v1508_v27  ;;  %v1469_v35 = vpop.f32.mrf.mxu2  ;;  %v1520_v43 = vand.u32 2147483648, %v1508_v27  ;;  %v1518_v63 = vand.u32 2147483647, %v1508_v27  ;;  %vm1514_vm0 = vweird.f32 %v1508_v27 }
 0x1cc   : > { %v1491_v33 = vmul.f32 %v4747_v31, %v1489_v22  ;;  %v1470_v34 = vadd.f32 %v1469_v35, %v1057_v8  ;;  %vm1496_vm12 = vweird.f32 %v4747_v31 }
 0x1cd   : > { %v1445_v37 = vpop.f32.mrf.mxu0  ;;  %vm1497_vm14 = vmor %vm1495_vm13, %vm1496_vm12  ;;  %v1521_v1 = vor.u32 1.1754944e-38, %v1520_v43  ;;  %vm1519_vm3 = vcmp.eq.f32.partialorder %v1518_v63, 8.507059e+37  ;;  %vm2235_vm12 = vcmask 1044484   ;;  %vm2238_vm13 = vcmask 1045509  }
 0x1ce   : > { %v1492_v38 = vsub.f32 1.0, %v1491_v33  ;;  %v1483_v39 = vadd.f32 %v5253_v53, %v1470_v34  ;;  %v1499_v53 = vand.u32 2147483647, %v1489_v22 }
 0x1d0   : > { %v1493_v44 = vmul.f32 %v4747_v31, %v1492_v38  ;;  %v3811_v9 = vmul.f32 -1.442695, %v1483_v39  ;;  %vm1500_vm1 = vcmp.eq.f32.partialorder %v1499_v53, 8.507059e+37 }
 0x1d1   : > { %v4749_v47 = vpop.eup %4748 }
 0x1d2   : > { %v1510_v50 = vmul.f32 %v4749_v47, %v1508_v27  ;;  %v1494_v52 = vadd.f32 %v4747_v31, %v1493_v44  ;;  %4750 = vpow2.f32 %v3811_v9  ;;  %vm1515_vm15 = vweird.f32 %v4749_v47 }
 0x1d3   : > { %v1471_v4 = vpop.f32.mrf.mxu2  ;;  %4752 = vtanh.f32 %v1457_v48  ;;  %vm1516_vm2 = vmor %vm1514_vm0, %vm1515_vm15  ;;  %vm2244_vm15 = vcmask 1047559   ;;  %vm2219_vm0 = vcmp.gt.f32.partialorder %v5275_v16, 0.0 }
 0x1d4   : > { %v1511_v56 = vsub.f32 1.0, %v1510_v50  ;;  %v1498_v46 = vsel %vm1497_vm14, %v4747_v31, %v1494_v52  ;;  %vm2241_vm14 = vcmask 1046534  }
 0x1d5   : > { %v1503_v0 = vsel %vm1500_vm1, %v1502_v57, %v1498_v46 }
 0x1d6   : > { %v1512_v58 = vmul.f32 %v4749_v47, %v1511_v56 }
 0x1d8   : > { %v4751_v60 = vpop.eup %4750  ;;  %v1513_v61 = vadd.f32 %v4749_v47, %v1512_v58 }
 0x1d9   : > { %v1528_v2 = vadd.f32 1.0, %v4751_v60  ;;  %v4753_v6 = vpop.eup %4752 }
 0x1da   : > { %v1517_v5 = vsel %vm1516_vm2, %v4749_v47, %v1513_v61  ;;  %v1546_v11 = vmul.f32 %v4753_v6, %v1503_v0 }
 0x1db   : > { %v1522_v12 = vsel %vm1519_vm3, %v1521_v1, %v1517_v5  ;;  %4754 = vrcp.f32 %v1528_v2  ;;  %v1540_v55 = vand.u32 2147483648, %v1528_v2  ;;  %v1538_v22 = vand.u32 2147483647, %v1528_v2 }
 0x1dc   : > { %v1545_v10 = vmul.f32 %v1544_v62, %v1522_v12  ;;  %vm1534_vm5 = vweird.f32 %v1528_v2 }
 0x1dd   : > { %v1541_v24 = vor.u32 1.1754944e-38, %v1540_v55  ;;  %vm1539_vm7 = vcmp.eq.f32.partialorder %v1538_v22, 8.507059e+37 }
 0x1de   : > { %v1547_v14 = vadd.f32 %v1546_v11, %v1545_v10 }
 0x1e0   : > { %3111 = vst [vmem:[#allocation5] sm:$0xff] %v1547_v14  ;;  %4756 = vtanh.f32 %v1547_v14 }
 0x1e1   : > { %v4755_v17 = vpop.eup %4754 }
 0x1e2   : > { %v1530_v19 = vmul.f32 %v4755_v17, %v1528_v2  ;;  %vm1535_vm4 = vweird.f32 %v4755_v17 }
 0x1e3   : > { %vm1536_vm6 = vmor %vm1534_vm5, %vm1535_vm4 }
 0x1e4   : > { %v1531_v20 = vsub.f32 1.0, %v1530_v19 }
 0x1e6   : > { %v1532_v21 = vmul.f32 %v4755_v17, %v1531_v20  ;;  %v4757_v25 = vpop.eup %4756 }
 0x1e8   : > { %v1533_v23 = vadd.f32 %v4755_v17, %v1532_v21 }
 0x1ea   : > { %v1537_v51 = vsel %vm1536_vm6, %v4755_v17, %v1533_v23 }
 0x1eb   : > { %v1542_v26 = vsel %vm1539_vm7, %v1541_v24, %v1537_v51 }
 0x1ec   : > { %v1549_v8 = vmul.f32 %v4757_v25, %v1542_v26  ;;  %v4627_v25 = vld [vmem:[#allocation12 + $0x38] sm:$0xff] }
 0x1ed   : > { %v4635_v26 = vld [vmem:[#allocation12 + $0x78] sm:$0xff] }
 0x1ee   : > { %v5260_v27 = vpack.c.bf16 %v1549_v8, %v1549_v8  ;;  %3110 = vst [vmem:[#allocation4] sm:$0xff] %v1549_v8  ;;  %v4643_v8 = vld [vmem:[#allocation12 + $0xb8] sm:$0xff] }
 0x1f0   : > { %v1553_v28 = vrot.slane %v5260_v27, 3 }
 0x1f2   : > { %v1557_v29 = vsel %vm1554_vm8, %v5260_v27, %v1553_v28  ;;  %v1560_v30 = vsel %vm1559_vm9, %v5260_v27, %v1553_v28  ;;  %v1564_v41 = vsel %vm1563_vm10, %v5260_v27, %v1553_v28  ;;  %v1568_v44 = vsel %vm1567_vm11, %v5260_v27, %v1553_v28  ;;  %v4626_v28 = vld [vmem:[#allocation12 + $0x30] sm:$0xff] }
 0x1f3   : > { %v3812_v31 = vpack.i.b16 %v1557_v29, %v1557_v29  ;;  %v1572_v35 = vunpack.i.h.s16 %v1557_v29  ;;  %v1562_v32 = vrot.slane %v1560_v30, 1  ;;  %v1566_v9 = vrot.slane %v1564_v41, 2  ;;  %v4651_v29 = vld [vmem:[#allocation12 + $0xf8] sm:$0xff]  ;;  %v4634_v30 = vld [vmem:[#allocation12 + $0x70] sm:$0xff] }
 0x1f4   : > { %v1570_v47 = vrot.slane %v1568_v44, 3  ;;  %v4623_v41 = vld [vmem:[#allocation12 + $0x18] sm:$0xff] }
 0x1f5   : > { %v1708_v33 = vperm.slane %v3812_v31, 0  ;;  %v1771_v34 = vpack.i.b16 %v1572_v35, %v1572_v35  ;;  %v3877_v36 = vpack.i.b16 %v1562_v32, %v1562_v32  ;;  %v1574_v37 = vunpack.i.h.s16 %v1562_v32  ;;  %v4642_v31 = vld [vmem:[#allocation12 + $0xb0] sm:$0xff]  ;;  %v4625_v32 = vld [vmem:[#allocation12 + $0x28] sm:$0xff]  ;;  %v4639_v44 = vld [vmem:[#allocation12 + $0x98] sm:$0xff] }
 0x1f6   : > { %v1576_v48 = vunpack.i.h.s16 %v1566_v9  ;;  %v3942_v49 = vpack.i.b16 %v1566_v9, %v1566_v9  ;;  %v1578_v50 = vunpack.i.h.s16 %v1570_v47  ;;  %v4007_v54 = vpack.i.b16 %v1570_v47, %v1570_v47  ;;  %v4650_v35 = vld [vmem:[#allocation12 + $0xf0] sm:$0xff]  ;;  %v4647_v9 = vld [vmem:[#allocation12 + $0xd8] sm:$0xff] }
 0x1f7   : > { %1766 = vmatmul.bf16.vlgmr.msrb.gmra.mxu0 %v1708_v33  ;;  %v1772_v38 = vperm.slane %v1771_v34, 0  ;;  %v1836_v39 = vperm.slane %v3877_v36, 0  ;;  %v1899_v40 = vpack.i.b16 %v1574_v37, %v1574_v37  ;;  %v4633_v33 = vld [vmem:[#allocation12 + $0x68] sm:$0xff]  ;;  %v4624_v37 = vld [vmem:[#allocation12 + $0x20] sm:$0xff] }
 0x1f8   : > { %v2027_v52 = vpack.i.b16 %v1576_v48, %v1576_v48  ;;  %v1964_v4 = vperm.slane %v3942_v49, 0  ;;  %v2155_v56 = vpack.i.b16 %v1578_v50, %v1578_v50  ;;  %v2092_v43 = vperm.slane %v4007_v54, 0  ;;  %2461 = vmatpush.bf16.msrb.mxu0 %v4627_v25  ;;  %v4641_v34 = vld [vmem:[#allocation12 + $0xa8] sm:$0xff]  ;;  %v4622_v48 = vld [vmem:[#allocation12 + $0x10] sm:$0xff] }
 0x1f9   : > { %1830 = vmatmul.bf16.vlgmr.msrb.gmra.mxu1 %v1772_v38  ;;  %1894 = vmatmul.bf16.vlgmr.msrb.gmra.mxu2 %v1836_v39  ;;  %v1900_v42 = vperm.slane %v1899_v40, 0  ;;  %v4649_v36 = vld [vmem:[#allocation12 + $0xe8] sm:$0xff]  ;;  %v4632_v38 = vld [vmem:[#allocation12 + $0x60] sm:$0xff]  ;;  %v4630_v50 = vld [vmem:[#allocation12 + $0x50] sm:$0xff] }
 0x1fa   : > { %v2028_v53 = vperm.slane %v2027_v52, 0  ;;  %v2156_v58 = vperm.slane %v2155_v56, 0  ;;  %2525 = vmatpush.bf16.msrb.mxu1 %v4635_v26  ;;  %2589 = vmatpush.bf16.msrb.mxu2 %v4643_v8  ;;  %v4640_v39 = vld [vmem:[#allocation12 + $0xa0] sm:$0xff]  ;;  %v4638_v52 = vld [vmem:[#allocation12 + $0x90] sm:$0xff]  ;;  %v4621_v56 = vld [vmem:[#allocation12 + $0x8] sm:$0xff] }
 0x1fb   : > { %1958 = vmatmul.bf16.vlgmr.msrb.gmra.mxu3 %v1900_v42  ;;  %v4648_v40 = vld [vmem:[#allocation12 + $0xe0] sm:$0xff]  ;;  %v4631_v42 = vld [vmem:[#allocation12 + $0x58] sm:$0xff]  ;;  %v4646_v54 = vld [vmem:[#allocation12 + $0xd0] sm:$0xff] }
 0x1fc   : > { %2653 = vmatpush.bf16.msrb.mxu3 %v4651_v29  ;;  %2462 = vmatpush.bf16.msrb.mxu0 %v4626_v28  ;;  %v4661_v25 = vld [vmem:[#allocation12 + $0x148] sm:$0xff]  ;;  %v4660_v29 = vld [vmem:[#allocation12 + $0x140] sm:$0xff] }
 0x1fd   : > { %v4669_v26 = vld [vmem:[#allocation12 + $0x188] sm:$0xff] }
 0x1fe   : > { %2526 = vmatpush.bf16.msrb.mxu1 %v4634_v30  ;;  %2590 = vmatpush.bf16.msrb.mxu2 %v4642_v31  ;;  %v4677_v8 = vld [vmem:[#allocation12 + $0x1c8] sm:$0xff]  ;;  %v4668_v30 = vld [vmem:[#allocation12 + $0x180] sm:$0xff] }
 0x1ff   : > { %v4676_v31 = vld [vmem:[#allocation12 + $0x1c0] sm:$0xff] }
 0x200   : > { %2654 = vmatpush.bf16.msrb.mxu3 %v4650_v35  ;;  %2463 = vmatpush.bf16.msrb.mxu0 %v4625_v32 }
 0x202   : > { %2527 = vmatpush.bf16.msrb.mxu1 %v4633_v33  ;;  %2591 = vmatpush.bf16.msrb.mxu2 %v4641_v34 }
 0x204   : > { %2655 = vmatpush.bf16.msrb.mxu3 %v4649_v36  ;;  %2464 = vmatpush.bf16.msrb.mxu0 %v4624_v37 }
 0x206   : > { %2528 = vmatpush.bf16.msrb.mxu1 %v4632_v38  ;;  %2592 = vmatpush.bf16.msrb.mxu2 %v4640_v39 }
 0x207   : > { %2022 = vmatmul.bf16.vlgmr.msra.gmra.mxu0 %v1964_v4 }
 0x208   : > { %2656 = vmatpush.bf16.msrb.mxu3 %v4648_v40  ;;  %2465 = vmatpush.bf16.msrb.mxu0 %v4623_v41  ;;  %v4691_v41 = vld [vmem:[#allocation19 + $0x38] sm:$0xff] }
 0x209   : > { %2086 = vmatmul.bf16.vlgmr.msra.gmra.mxu1 %v2028_v53  ;;  %2150 = vmatmul.bf16.vlgmr.msra.gmra.mxu2 %v2092_v43  ;;  %v4620_v53 = vld [vmem:[#allocation12] sm:$0xff]  ;;  %v4659_v43 = vld [vmem:[#allocation12 + $0x138] sm:$0xff] }
 0x20a   : > { %2529 = vmatpush.bf16.msrb.mxu1 %v4631_v42  ;;  %2593 = vmatpush.bf16.msrb.mxu2 %v4639_v44 }
 0x20b   : > { %2214 = vmatmul.bf16.vlgmr.msra.gmra.mxu3 %v2156_v58 }
 0x20c   : > { %2657 = vmatpush.bf16.msrb.mxu3 %v4647_v9  ;;  %2466 = vmatpush.bf16.msrb.mxu0 %v4622_v48 }
 0x20e   : > { %2530 = vmatpush.bf16.msrb.mxu1 %v4630_v50  ;;  %2594 = vmatpush.bf16.msrb.mxu2 %v4638_v52  ;;  %v4690_v52 = vld [vmem:[#allocation19 + $0x30] sm:$0xff] }
 0x210   : > { %2658 = vmatpush.bf16.msrb.mxu3 %v4646_v54  ;;  %2467 = vmatpush.bf16.msrb.mxu0 %v4621_v56 }
 0x214   : > { %2468 = vmatpush.bf16.msrb.mxu0 %v4620_v53 }
 0x218   : > { %2717 = vmatpush.bf16.msra.mxu0 %v4659_v43  ;;  %v4689_v43 = vld [vmem:[#allocation19 + $0x28] sm:$0xff] }
 0x274   : > { %v1767_v46 = vpop.f32.mrf.mxu0 }
 0x276   : > { %v1831_v63 = vpop.f32.mrf.mxu1 }
 0x277   : > { %v2228_v62 = vrot.slane %v1831_v63, 7  ;;  %v4658_v63 = vld [vmem:[#allocation12 + $0x130] sm:$0xff] }
 0x278   : > { %2718 = vmatpush.bf16.msra.mxu0 %v4658_v63  ;;  %v4688_v63 = vld [vmem:[#allocation19 + $0x20] sm:$0xff] }
 0x279   : > { %v2229_v45 = vsel %vm1559_vm9, %v2228_v62, %v1767_v46  ;;  %v4656_v62 = vld [vmem:[#allocation12 + $0x120] sm:$0xff] }
 0x27c   : > { %v1769_v57 = vpop.f32.mrf.mxu0  ;;  %v1895_v59 = vpop.f32.mrf.mxu2 }
 0x27d   : > { %v2230_v0 = vrot.slane %v1895_v59, 6  ;;  %v4657_v57 = vld [vmem:[#allocation12 + $0x128] sm:$0xff] }
 0x27e   : > { %v1833_v60 = vpop.f32.mrf.mxu1  ;;  %v1959_v61 = vpop.f32.mrf.mxu3  ;;  %2719 = vmatpush.bf16.msra.mxu0 %v4657_v57  ;;  %v4629_v59 = vld [vmem:[#allocation12 + $0x48] sm:$0xff] }
 0x27f   : > { %v2232_v3 = vrot.slane %v1959_v61, 5  ;;  %v2231_v12 = vsel %vm1563_vm10, %v2230_v0, %v2229_v45  ;;  %v4637_v60 = vld [vmem:[#allocation12 + $0x88] sm:$0xff]  ;;  %2531 = vmatpush.bf16.msrb.mxu1 %v4629_v59  ;;  %v4628_v0 = vld [vmem:[#allocation12 + $0x40] sm:$0xff]  ;;  %v4675_v45 = vld [vmem:[#allocation12 + $0x1b8] sm:$0xff] }
 0x280   : > { %2595 = vmatpush.bf16.msrb.mxu2 %v4637_v60  ;;  %v4645_v61 = vld [vmem:[#allocation12 + $0xc8] sm:$0xff] }
 0x281   : > { %v2233_v10 = vsel %vm1567_vm11, %v2232_v3, %v2231_v12  ;;  %2659 = vmatpush.bf16.msrb.mxu3 %v4645_v61  ;;  %v4644_v3 = vld [vmem:[#allocation12 + $0xc0] sm:$0xff]  ;;  %v4666_v12 = vld [vmem:[#allocation12 + $0x170] sm:$0xff] }
 0x282   : > { %2720 = vmatpush.bf16.msra.mxu0 %v4656_v62  ;;  %v4687_v62 = vld [vmem:[#allocation19 + $0x18] sm:$0xff] }
 0x283   : > { %2532 = vmatpush.bf16.msrb.mxu1 %v4628_v0 }
 0x284   : > { %v1897_v1 = vpop.f32.mrf.mxu2  ;;  %v2023_v2 = vpop.f32.mrf.mxu0 }
 0x285   : > { %v2234_v7 = vrot.slane %v2023_v2, 4  ;;  %v4636_v1 = vld [vmem:[#allocation12 + $0x80] sm:$0xff]  ;;  %v4667_v2 = vld [vmem:[#allocation12 + $0x178] sm:$0xff]  ;;  %2660 = vmatpush.bf16.msrb.mxu3 %v4644_v3 }
 0x286   : > { %v1961_v5 = vpop.f32.mrf.mxu3  ;;  %v2087_v6 = vpop.f32.mrf.mxu1  ;;  %2596 = vmatpush.bf16.msrb.mxu2 %v4636_v1  ;;  %v4686_v3 = vld [vmem:[#allocation19 + $0x10] sm:$0xff] }
 0x287   : > { %v2237_v11 = vrot.slane %v2087_v6, 3  ;;  %v2236_v13 = vsel %vm2235_vm12, %v2234_v7, %v2233_v10  ;;  %v4655_v5 = vld [vmem:[#allocation12 + $0x118] sm:$0xff]  ;;  %2781 = vmatpush.bf16.msra.mxu1 %v4667_v2  ;;  %v4674_v7 = vld [vmem:[#allocation12 + $0x1b0] sm:$0xff] }
 0x288   : > { %v4683_v6 = vld [vmem:[#allocation12 + $0x1f8] sm:$0xff]  ;;  %2721 = vmatpush.bf16.msra.mxu0 %v4655_v5  ;;  %v4654_v10 = vld [vmem:[#allocation12 + $0x110] sm:$0xff] }
 0x289   : > { %v2239_v18 = vsel %vm2238_vm13, %v2237_v11, %v2236_v13  ;;  %2909 = vmatpush.bf16.msra.mxu3 %v4683_v6  ;;  %v4682_v11 = vld [vmem:[#allocation12 + $0x1f0] sm:$0xff]  ;;  %v4665_v13 = vld [vmem:[#allocation12 + $0x168] sm:$0xff] }
 0x28a   : > { %2845 = vmatpush.bf16.msra.mxu2 %v4675_v45  ;;  %v4685_v6 = vld [vmem:[#allocation19 + $0x8] sm:$0xff] }
 0x28b   : > { %2782 = vmatpush.bf16.msra.mxu1 %v4666_v12  ;;  %v4684_v12 = vld [vmem:[#allocation19] sm:$0xff] }
 0x28c   : > { %v2025_v14 = vpop.f32.mrf.mxu0  ;;  %v2151_v15 = vpop.f32.mrf.mxu2  ;;  %2722 = vmatpush.bf16.msra.mxu0 %v4654_v10  ;;  %v4698_v10 = vld [vmem:[#allocation19 + $0x70] sm:$0xff] }
 0x28d   : > { %v2240_v17 = vrot.slane %v2151_v15, 2  ;;  %v4673_v14 = vld [vmem:[#allocation12 + $0x1a8] sm:$0xff]  ;;  %2910 = vmatpush.bf16.msra.mxu3 %v4682_v11  ;;  %v4697_v11 = vld [vmem:[#allocation19 + $0x68] sm:$0xff] }
 0x28e   : > { %v2089_v19 = vpop.f32.mrf.mxu1  ;;  %v2215_v20 = vpop.f32.mrf.mxu3  ;;  %2846 = vmatpush.bf16.msra.mxu2 %v4674_v7  ;;  %v4653_v15 = vld [vmem:[#allocation12 + $0x108] sm:$0xff] }
 0x28f   : > { %v2243_v55 = vrot.slane %v2215_v20, 1  ;;  %v2242_v21 = vsel %vm2241_vm14, %v2240_v17, %v2239_v18  ;;  %2783 = vmatpush.bf16.msra.mxu1 %v4665_v13  ;;  %v4664_v17 = vld [vmem:[#allocation12 + $0x160] sm:$0xff]  ;;  %v4696_v13 = vld [vmem:[#allocation19 + $0x60] sm:$0xff] }
 0x290   : > { %v4672_v18 = vld [vmem:[#allocation12 + $0x1a0] sm:$0xff]  ;;  %2723 = vmatpush.bf16.msra.mxu0 %v4653_v15 }
 0x291   : > { %v2245_v22 = vsel %vm2244_vm15, %v2243_v55, %v2242_v21  ;;  %v4652_v19 = vld [vmem:[#allocation12 + $0x100] sm:$0xff]  ;;  %v4663_v55 = vld [vmem:[#allocation12 + $0x158] sm:$0xff] }
 0x292   : > { %v2247_v23 = vsel %vm2219_vm0, %v2245_v22, -1e+30  ;;  %2847 = vmatpush.bf16.msra.mxu2 %v4673_v14  ;;  %v4680_v20 = vld [vmem:[#allocation12 + $0x1e0] sm:$0xff]  ;;  %v4671_v21 = vld [vmem:[#allocation12 + $0x198] sm:$0xff] }
 0x293   : > { %2248 = vmax.xlane.f32.xlu0 %v2247_v23  ;;  %2784 = vmatpush.bf16.msra.mxu1 %v4664_v17  ;;  %v4679_v22 = vld [vmem:[#allocation12 + $0x1d8] sm:$0xff]  ;;  %v4699_v7 = vld [vmem:[#allocation19 + $0x78] sm:$0xff]  ;;  %v4692_v17 = vld [vmem:[#allocation19 + $0x40] sm:$0xff] }
 0x294   : > { %v2153_v24 = vpop.f32.mrf.mxu2  ;;  %2724 = vmatpush.bf16.msra.mxu0 %v4652_v19  ;;  %v4695_v14 = vld [vmem:[#allocation19 + $0x58] sm:$0xff]  ;;  %v4694_v15 = vld [vmem:[#allocation19 + $0x50] sm:$0xff] }
 0x295   : > { %v4670_v24 = vld [vmem:[#allocation12 + $0x190] sm:$0xff] }
 0x296   : > { %v2217_v51 = vpop.f32.mrf.mxu3  ;;  %2848 = vmatpush.bf16.msra.mxu2 %v4672_v18 }
 0x297   : > { %2785 = vmatpush.bf16.msra.mxu1 %v4663_v55  ;;  %v4678_v51 = vld [vmem:[#allocation12 + $0x1d0] sm:$0xff] }
 0x29a   : > { %2849 = vmatpush.bf16.msra.mxu2 %v4671_v21 }
 0x29e   : > { %2850 = vmatpush.bf16.msra.mxu2 %v4670_v24 }
 0x2a2   : > { %2851 = vmatpush.bf16.msra.mxu2 %v4669_v26 }
 0x2a6   : > { %2852 = vmatpush.bf16.msra.mxu2 %v4668_v30 }
 0x306   : > { %v2249_v47 = vpop.xlane.xlu0 %2248 }
 0x307   : > { %v2250_v49 = vsub.f32 %v2247_v23, %v2249_v47  ;;  %v4662_v23 = vld [vmem:[#allocation12 + $0x150] sm:$0xff] }
 0x308   : > { %2786 = vmatpush.bf16.msra.mxu1 %v4662_v23 }
 0x309   : > { %v2251_v4 = vmul.f32 1.442695, %v2250_v49 }
 0x30b   : > { %4758 = vpow2.f32 %v2251_v4 }
 0x30c   : > { %2787 = vmatpush.bf16.msra.mxu1 %v4661_v25 }
 0x310   : > { %2788 = vmatpush.bf16.msra.mxu1 %v4660_v29 }
 0x311   : > { %v4759_v58 = vpop.eup %4758 }
 0x312   : > { %v5282_v46 = vmul.f32 %v4759_v58, %v5275_v16  ;;  %v4681_v16 = vld [vmem:[#allocation12 + $0x1e8] sm:$0xff] }
 0x313   : > { %2911 = vmatpush.bf16.msra.mxu3 %v4681_v16  ;;  %v4693_v16 = vld [vmem:[#allocation19 + $0x48] sm:$0xff] }
 0x314   : > { %2254 = vadd.xlane.f32.xlu0 %v5282_v46 }
 0x317   : > { %2912 = vmatpush.bf16.msra.mxu3 %v4680_v20 }
 0x31b   : > { %2913 = vmatpush.bf16.msra.mxu3 %v4679_v22 }
 0x31f   : > { %2914 = vmatpush.bf16.msra.mxu3 %v4678_v51 }
 0x323   : > { %2915 = vmatpush.bf16.msra.mxu3 %v4677_v8 }
 0x327   : > { %2916 = vmatpush.bf16.msra.mxu3 %v4676_v31 }
 0x387   : > { %v2255_v28 = vpop.xlane.xlu0 %2254 }
 0x388   : > { %4760 = vrcp.f32 %v2255_v28 }
 0x38e   : > { %v4761_v35 = vpop.eup %4760 }
 0x38f   : > { %v2257_v32 = vmul.f32 %v4761_v35, %v5282_v46 }
 0x391   : > { %v2258_v33 = vpack.c.bf16 %v2257_v32, %v2257_v32  ;;  %3107 = vst [vmem:[%s3106_s17] sm:$0xff] %v2257_v32 }
 0x392   :  { %3138 = dma.vmem_to_hbm [thread:$0]  (%p167_p0), %s3131_s12, 640, %s3133_s2, [#allocation23], %s5032_s20, %s5032_s20, %s5033_s21  }
 0x393   : > { %v2260_v34 = vrot.slane %v2258_v33, 3 }
 0x395   : > { %v2263_v36 = vsel %vm1554_vm8, %v2258_v33, %v2260_v34  ;;  %v2265_v37 = vsel %vm1559_vm9, %v2258_v33, %v2260_v34  ;;  %v2268_v54 = vsel %vm1563_vm10, %v2258_v33, %v2260_v34  ;;  %v2271_v56 = vsel %vm1567_vm11, %v2258_v33, %v2260_v34 }
 0x396   : > { %v4072_v38 = vpack.i.b16 %v2263_v36, %v2263_v36  ;;  %v2275_v39 = vunpack.i.h.s16 %v2263_v36  ;;  %v2267_v40 = vrot.slane %v2265_v37, 1  ;;  %v2270_v53 = vrot.slane %v2268_v54, 2 }
 0x397   : > { %v2273_v58 = vrot.slane %v2271_v56, 3 }
 0x398   : > { %v2411_v42 = vperm.slane %v4072_v38, 0  ;;  %v2474_v44 = vpack.i.b16 %v2275_v39, %v2275_v39  ;;  %v4137_v9 = vpack.i.b16 %v2267_v40, %v2267_v40  ;;  %v2277_v47 = vunpack.i.h.s16 %v2267_v40 }
 0x399   : > { %v2279_v46 = vunpack.i.h.s16 %v2270_v53  ;;  %v4202_v57 = vpack.i.b16 %v2270_v53, %v2270_v53  ;;  %v2281_v59 = vunpack.i.h.s16 %v2273_v58  ;;  %v4267_v61 = vpack.i.b16 %v2273_v58, %v2273_v58 }
 0x39a   : > { %2469 = vmatmul.bf16.vlgmr.msrb.gmra.mxu0 %v2411_v42  ;;  %v2475_v48 = vperm.slane %v2474_v44, 0  ;;  %v2539_v49 = vperm.slane %v4137_v9, 0  ;;  %v2602_v50 = vpack.i.b16 %v2277_v47, %v2277_v47 }
 0x39b   : > { %3078 = vmatpush.bf16.msrb.mxu0 %v4691_v41  ;;  %v2730_v60 = vpack.i.b16 %v2279_v46, %v2279_v46  ;;  %v2667_v0 = vperm.slane %v4202_v57, 0  ;;  %v2858_v1 = vpack.i.b16 %v2281_v59, %v2281_v59  ;;  %v2795_v45 = vperm.slane %v4267_v61, 0 }
 0x39c   : > { %2533 = vmatmul.bf16.vlgmr.msrb.gmra.mxu1 %v2475_v48  ;;  %2597 = vmatmul.bf16.vlgmr.msrb.gmra.mxu2 %v2539_v49  ;;  %v2603_v4 = vperm.slane %v2602_v50, 0  ;;  %v4725_v50 = vld [vmem:[%s5327_s9] ss:$0 sm:$0xff] }
 0x39d   : > { %v2731_v2 = vperm.slane %v2730_v60, 0  ;;  %v2859_v5 = vperm.slane %v2858_v1, 0  ;;  %3091 = vmatpush.bf16.msrb.mxu1 %v4699_v7 }
 0x39e   : > { %2661 = vmatmul.bf16.vlgmr.msrb.gmra.mxu3 %v2603_v4 }
 0x39f   : > { %3079 = vmatpush.bf16.msrb.mxu0 %v4690_v52 }
 0x3a1   : > { %3092 = vmatpush.bf16.msrb.mxu1 %v4698_v10 }
 0x3a3   : > { %3080 = vmatpush.bf16.msrb.mxu0 %v4689_v43 }
 0x3a5   : > { %3093 = vmatpush.bf16.msrb.mxu1 %v4697_v11 }
 0x3a7   : > { %3081 = vmatpush.bf16.msrb.mxu0 %v4688_v63 }
 0x3a9   : > { %3094 = vmatpush.bf16.msrb.mxu1 %v4696_v13 }
 0x3aa   : > { %2725 = vmatmul.bf16.vlgmr.msra.gmra.mxu0 %v2667_v0 }
 0x3ab   : > { %3082 = vmatpush.bf16.msrb.mxu0 %v4687_v62 }
 0x3ac   : > { %2789 = vmatmul.bf16.vlgmr.msra.gmra.mxu1 %v2731_v2  ;;  %2853 = vmatmul.bf16.vlgmr.msra.gmra.mxu2 %v2795_v45 }
 0x3ad   : > { %3095 = vmatpush.bf16.msrb.mxu1 %v4695_v14 }
 0x3ae   : > { %2917 = vmatmul.bf16.vlgmr.msra.gmra.mxu3 %v2859_v5 }
 0x3af   : > { %3083 = vmatpush.bf16.msrb.mxu0 %v4686_v3 }
 0x3b1   : > { %3096 = vmatpush.bf16.msrb.mxu1 %v4694_v15 }
 0x3b3   : > { %3084 = vmatpush.bf16.msrb.mxu0 %v4685_v6 }
 0x3b5   : > { %3097 = vmatpush.bf16.msrb.mxu1 %v4693_v16 }
 0x3b7   : > { %3085 = vmatpush.bf16.msrb.mxu0 %v4684_v12 }
 0x3b9   : > { %3098 = vmatpush.bf16.msrb.mxu1 %v4692_v17 }
 0x3ba   : > { %3086 = vmatmul.bf16.vlgmr.msrb.gmra.mxu0 %v5260_v27 }
 0x417   : > { %v2470_v18 = vpop.f32.mrf.mxu0 }
 0x419   : > { %v2534_v19 = vpop.f32.mrf.mxu1 }
 0x41a   : > { %v2930_v22 = vrot.slane %v2534_v19, 7 }
 0x41c   : > { %v2931_v25 = vsel %vm1559_vm9, %v2930_v22, %v2470_v18 }
 0x41f   : > { %v2472_v20 = vpop.f32.mrf.mxu0  ;;  %v2598_v27 = vpop.f32.mrf.mxu2 }
 0x420   : > { %v2932_v23 = vrot.slane %v2598_v27, 6 }
 0x421   : > { %v2536_v55 = vpop.f32.mrf.mxu1  ;;  %v2662_v21 = vpop.f32.mrf.mxu3 }
 0x422   : > { %v2934_v26 = vrot.slane %v2662_v21, 5  ;;  %v2933_v29 = vsel %vm1563_vm10, %v2932_v23, %v2931_v25 }
 0x424   : > { %v2935_v31 = vsel %vm1567_vm11, %v2934_v26, %v2933_v29 }
 0x427   : > { %v2600_v24 = vpop.f32.mrf.mxu2  ;;  %v2726_v51 = vpop.f32.mrf.mxu0 }
 0x428   : > { %v2936_v30 = vrot.slane %v2726_v51, 4 }
 0x429   : > { %v2664_v8 = vpop.f32.mrf.mxu3  ;;  %v2790_v28 = vpop.f32.mrf.mxu1 }
 0x42a   : > { %v2938_v35 = vrot.slane %v2790_v28, 3  ;;  %v2937_v32 = vsel %vm2235_vm12, %v2936_v30, %v2935_v31 }
 0x42c   : > { %v2939_v37 = vsel %vm2238_vm13, %v2938_v35, %v2937_v32 }
 0x42f   : > { %v2728_v33 = vpop.f32.mrf.mxu0  ;;  %v2854_v34 = vpop.f32.mrf.mxu2 }
 0x430   : > { %v2940_v36 = vrot.slane %v2854_v34, 2 }
 0x431   : > { %v2792_v38 = vpop.f32.mrf.mxu1  ;;  %v2918_v39 = vpop.f32.mrf.mxu3 }
 0x432   : > { %v2941_v40 = vsel %vm2241_vm14, %v2940_v36, %v2939_v37  ;;  %v2942_v41 = vrot.slane %v2918_v39, 1 }
 0x434   : > { %v2943_v42 = vsel %vm2244_vm15, %v2942_v41, %v2941_v40 }
 0x435   : > { %v2945_v44 = vpack.c.bf16 %v2943_v42, %v2943_v42  ;;  %3112 = vst [vmem:[#allocation6] sm:$0xff] %v2943_v42 }
 0x437   : > { %v2856_v9 = vpop.f32.mrf.mxu2  ;;  %v3087_v47 = vpop.f32.mrf.mxu0  ;;  %3099 = vmatmul.bf16.vlgmr.msrb.gmra.mxu1 %v2945_v44 }
 0x438   : > { %v3088_v52 = vadd.f32 %v4725_v50, %v3087_v47 }
 0x439   : > { %v2920_v48 = vpop.f32.mrf.mxu3 }
 0x43f   : > { %v3089_v49 = vpop.f32.mrf.mxu0 }
 0x4b4   : > { %v3100_v54 = vpop.f32.mrf.mxu1 }
 0x4b5   : > { %v3101_v4 = vadd.f32 %v3100_v54, %v3088_v52 }
 0x4b7   : > { %3105 = vst [vmem:[%s3104_s24] sm:$0xff] %v3101_v4 }
 0x4b8   :  { %169 = sbr.rel (!%p167_p0) target bundleno = 44 (0x2c), region = 110 }
 0x4b9   :  { %3125 = dma.vmem_to_hbm [thread:$0]  (%p167_p0), %s3118_s29, 640, %s3120_s28, [#allocation9], %s5032_s20, %s5032_s20, %s5033_s21  }
 0x4bc   : > { %v3102_v56 = vpop.f32.mrf.mxu1 }
 0x4bd   :  { %5016 = dma.done.wait [#allocation9], 640  }
 0x4be   :  { %5017 = vsyncadd [#allocation9], 4294966656 }
 0x4bf   :  { %5018 = dma.done.wait [#allocation23], 640  }
 0x4c0   :  { %5019 = vsyncadd [#allocation23], 4294966656 }
 0x4c1   :  { %3147 = vsyncpa [#allocation8], 1 }
 0x4c2   :  { %3148 = vsyncpa [#allocation11], 1 }
 0x4c3   :  { %3149 = vsyncpa [#allocation14], 1 }
 0x4c4   :  { %3150 = vsyncpa [#allocation17], 1 }
 0x4c5   :  { %3151 = vsyncpa [#allocation20], 1 }
 0x4c6   :  { %3152 = vsyncpa [#allocation9], 1 }
 0x4c7   :  { %3153 = vsyncpa [#allocation23], 1 }

</bundles_post_ra>
